<compile_context>
chip_gen: v7x
topology: tpu7x:2x2x1
jax: 0.10.0
libtpu: 0.0.40
codegen_flags: <defaults>
</compile_context>

<pallas_src>
import functools

import jax
import jax.numpy as jnp
from jax.experimental import pallas as pl
from jax.experimental.pallas import tpu as pltpu


def _round_up(x, m):
    return (x + m - 1) // m * m


def _conv3x3_bn_relu_kernel(x_ref, w_ref, shift_ref, o_ref, patch_ref):
    # x_ref:     (1, H+2, W+2, Cin_pad)  bf16 zero-padded input, one batch elem
    # w_ref:     (K_pad, TC)             bf16 im2col weights (BN scale folded in)
    # shift_ref: (1, TC)                 f32 folded BN shift (beta - mean*scale)
    # o_ref:     (1, H*W, TC)            bf16 lane-dense output slab
    # patch_ref: (H*W, K_pad)            bf16 VMEM scratch: im2col patches
    c = pl.program_id(1)
    H = x_ref.shape[1] - 2
    W = x_ref.shape[2] - 2
    cin = x_ref.shape[3]
    k_pad = patch_ref.shape[1]

    # Build the im2col patches only once per batch element (x block changes
    # only with the outer grid axis); every Cout tile reuses the scratch.
    @pl.when(c == 0)
    def _build_patches():
        taps = []
        for dh in range(3):
            for dw in range(3):
                taps.append(
                    x_ref[0, dh:dh + H, dw:dw + W, :].reshape(H * W, cin))
        if k_pad > 9 * cin:  # zero-fill the K padding (matching weight rows are 0)
            taps.append(jnp.zeros((H * W, k_pad - 9 * cin), x_ref.dtype))
        patch_ref[...] = jnp.concatenate(taps, axis=-1)      # (H*W, K_pad)

    # One MXU contraction over K = 9*Cin_pad (padded to 128) per Cout tile.
    acc = jnp.dot(patch_ref[...], w_ref[...],
                  preferred_element_type=jnp.float32)         # (H*W, TC) f32

    # Fused inference BatchNorm shift + ReLU epilogue (f32), bf16 store.
    y = jnp.maximum(acc + shift_ref[0, :], 0.0)
    o_ref[0] = y.astype(o_ref.dtype)


def conv3x3_bn_relu(x_nchw, weight_oihw, gamma, beta, running_mean,
                    running_var, *, stride=1, eps=1e-5):
    """Fused conv3x3 + BatchNorm(eval) + ReLU.  Inputs use PyTorch conventions."""
    assert stride == 1, "only stride=1 (module default) is implemented"
    N, Cin, H, W = x_nchw.shape
    Cout = weight_oihw.shape[0]

    CIN_PAD = _round_up(Cin, 8)
    # Cout tiling: single resident tile (one matmul, weight DMA'd once) when it
    # fits comfortably; otherwise 256-wide tiles (fills the 2x256 MXU on
    # v6e/v7x, lane-dense everywhere).
    cp128 = _round_up(Cout, 128)
    TC = cp128 if cp128 <= 512 else 256
    COUT_PAD = _round_up(Cout, TC)
    n_ct = COUT_PAD // TC
    K = 9 * CIN_PAD
    K_PAD = _round_up(K, 128)

    # --- wrapper glue (plain JAX): layout, bf16 cast, padding, BN fold -------
    # Fold BN in f32: scale into the weights, shift stays a per-channel add.
    scale = (gamma / jnp.sqrt(running_var + eps)).astype(jnp.float32)
    shift = (beta - running_mean * scale).astype(jnp.float32)

    # Cast to bf16 first so the padded HBM copy is half-size.
    x_nhwc = jnp.transpose(x_nchw, (0, 2, 3, 1)).astype(jnp.bfloat16)
    x_pad = jnp.pad(x_nhwc, ((0, 0), (1, 1), (1, 1), (0, CIN_PAD - Cin)))

    # (Cout, Cin, 3, 3) -> (3, 3, Cin, Cout); fold scale (f32) -> bf16 ->
    # pad -> (K_PAD, Cout_pad).  Row order (dh, dw, cin) matches the in-kernel
    # tap concatenation order; padded K rows are zero.
    w_hwio = jnp.transpose(weight_oihw, (2, 3, 1, 0)).astype(jnp.float32)
    w_hwio = (w_hwio * scale[None, None, None, :]).astype(jnp.bfloat16)
    w_hwio = jnp.pad(w_hwio, ((0, 0), (0, 0),
                              (0, CIN_PAD - Cin), (0, COUT_PAD - Cout)))
    w_mat = w_hwio.reshape(K, COUT_PAD)
    w_mat = jnp.pad(w_mat, ((0, K_PAD - K), (0, 0)))

    shift2d = jnp.pad(shift, (0, COUT_PAD - Cout)).reshape(1, COUT_PAD)

    Hp, Wp = H + 2, W + 2
    out_flat = pl.pallas_call(
        _conv3x3_bn_relu_kernel,
        out_shape=jax.ShapeDtypeStruct((N, H * W, COUT_PAD), jnp.bfloat16),
        grid_spec=pltpu.PrefetchScalarGridSpec(
            num_scalar_prefetch=0,
            grid=(N, n_ct),
            in_specs=[
                pl.BlockSpec((1, Hp, Wp, CIN_PAD), lambda n, c: (n, 0, 0, 0)),
                pl.BlockSpec((K_PAD, TC), lambda n, c: (0, c)),
                pl.BlockSpec((1, TC), lambda n, c: (0, c)),
            ],
            out_specs=pl.BlockSpec((1, H * W, TC), lambda n, c: (n, 0, c)),
            scratch_shapes=[pltpu.VMEM((H * W, K_PAD), jnp.bfloat16)],
        ),
        compiler_params=pltpu.CompilerParams(
            # N is independent (megacore-shardable); the Cout-tile axis carries
            # the im2col scratch across steps, so it must be "arbitrary".
            dimension_semantics=("parallel", "arbitrary"),
            vmem_limit_bytes=48 * 1024 * 1024),
    )(x_pad, w_mat, shift2d)

    # Free layout plumbing back to PyTorch NCHW / f32.
    out_nhwc = out_flat.reshape(N, H, W, COUT_PAD)[..., :Cout]
    return jnp.transpose(out_nhwc, (0, 3, 1, 2)).astype(jnp.float32)


def _reference(x_nchw, weight_oihw, gamma, beta, running_mean, running_var,
               eps=1e-5):
    out = jax.lax.conv_general_dilated(
        x_nchw.astype(jnp.float32), weight_oihw.astype(jnp.float32),
        window_strides=(1, 1), padding=((1, 1), (1, 1)),
        dimension_numbers=("NCHW", "OIHW", "NCHW"))
    scale = gamma / jnp.sqrt(running_var + eps)
    shift = beta - running_mean * scale
    out = out * scale[None, :, None, None] + shift[None, :, None, None]
    return jnp.maximum(out, 0.0)


if __name__ == "__main__":
    key = jax.random.PRNGKey(0)
    k_x, k_w, k_g, k_b, k_m, k_v = jax.random.split(key, 6)

    N, in_planes, planes, H, W = 2, 4, 8, 16, 16

    x = jax.random.normal(k_x, (N, in_planes, H, W), jnp.float32)
    # Conv2d weight, PyTorch (out, in, kh, kw) layout, kaiming-ish scale.
    fan_in = in_planes * 3 * 3
    weight = jax.random.normal(k_w, (planes, in_planes, 3, 3),
                               jnp.float32) * (2.0 / fan_in) ** 0.5
    # BatchNorm2d parameters / running stats (deterministic, non-trivial).
    gamma = 1.0 + 0.1 * jax.random.normal(k_g, (planes,), jnp.float32)
    beta = 0.1 * jax.random.normal(k_b, (planes,), jnp.float32)
    running_mean = 0.1 * jax.random.normal(k_m, (planes,), jnp.float32)
    running_var = jax.random.uniform(k_v, (planes,), jnp.float32, 0.5, 1.5)

    fused = jax.jit(functools.partial(conv3x3_bn_relu, stride=1))
    out = fused(x, weight, gamma, beta, running_mean, running_var)
    out = jax.block_until_ready(out)

    ref = _reference(x, weight, gamma, beta, running_mean, running_var)
    assert out.shape == (N, planes, H, W)
    max_err = float(jnp.max(jnp.abs(out - ref)))
    # bf16 matmul inputs + bf16 output store with f32 accumulation.
    assert jnp.allclose(out, ref, atol=5e-2, rtol=5e-2), (
        f"mismatch vs reference (max abs err {max_err})")

    print("KERNEL_OK")
</pallas_src>

<mosaic_0001>
module attributes {stable_mosaic.version = 11 : i64} {
  func.func @_conv3x3_bn_relu_kernel(%arg0: i32, %arg1: i32, %arg2: memref<1x18x18x8xbf16, #tpu.memory_space<vmem>>, %arg3: memref<128x128xbf16, #tpu.memory_space<vmem>>, %arg4: memref<1x128xf32, #tpu.memory_space<vmem>>, %arg5: memref<1x256x128xbf16, #tpu.memory_space<vmem>>, %arg6: memref<256x128xbf16, #tpu.memory_space<vmem>>) attributes {dimension_semantics = [#tpu.dimension_semantics<parallel>, #tpu.dimension_semantics<arbitrary>], iteration_bounds = array<i64: 2, 1>, scalar_prefetch = 0 : i64, scratch_operands = 1 : i64, tpu.core_type = #tpu.core_type<tc>, window_params = [{transform_indices = @transform_0, window_bounds = array<i64: 1, 18, 18, 8>}, {transform_indices = @transform_1, window_bounds = array<i64: 128, 128>}, {transform_indices = @transform_2, window_bounds = array<i64: 1, 128>}, {transform_indices = @transform_3, window_bounds = array<i64: 1, 256, 128>}]} {
    %c0_i32 = arith.constant 0 : i32
    %0 = arith.cmpi eq, %arg1, %c0_i32 : i32
    %1 = arith.extui %0 : i1 to i32
    %c0_i32_0 = arith.constant 0 : i32
    %2 = arith.cmpi ne, %1, %c0_i32_0 : i32
    scf.if %2 {
      %c0_10 = arith.constant 0 : index
      %c0_11 = arith.constant 0 : index
      %c0_12 = arith.constant 0 : index
      %c0_13 = arith.constant 0 : index
      %17 = vector.load %arg2[%c0_10, %c0_11, %c0_12, %c0_13] : memref<1x18x18x8xbf16, #tpu.memory_space<vmem>>, vector<1x16x16x8xbf16>
      %18 = vector.shape_cast %17 : vector<1x16x16x8xbf16> to vector<16x16x8xbf16>
      %19 = vector.shape_cast %18 : vector<16x16x8xbf16> to vector<256x8xbf16>
      %c0_14 = arith.constant 0 : index
      %c0_15 = arith.constant 0 : index
      %c1 = arith.constant 1 : index
      %c0_16 = arith.constant 0 : index
      %20 = vector.load %arg2[%c0_14, %c0_15, %c1, %c0_16] : memref<1x18x18x8xbf16, #tpu.memory_space<vmem>>, vector<1x16x16x8xbf16>
      %21 = vector.shape_cast %20 : vector<1x16x16x8xbf16> to vector<16x16x8xbf16>
      %22 = vector.shape_cast %21 : vector<16x16x8xbf16> to vector<256x8xbf16>
      %c0_17 = arith.constant 0 : index
      %c0_18 = arith.constant 0 : index
      %c2 = arith.constant 2 : index
      %c0_19 = arith.constant 0 : index
      %23 = vector.load %arg2[%c0_17, %c0_18, %c2, %c0_19] : memref<1x18x18x8xbf16, #tpu.memory_space<vmem>>, vector<1x16x16x8xbf16>
      %24 = vector.shape_cast %23 : vector<1x16x16x8xbf16> to vector<16x16x8xbf16>
      %25 = vector.shape_cast %24 : vector<16x16x8xbf16> to vector<256x8xbf16>
      %c0_20 = arith.constant 0 : index
      %c1_21 = arith.constant 1 : index
      %c0_22 = arith.constant 0 : index
      %c0_23 = arith.constant 0 : index
      %26 = vector.load %arg2[%c0_20, %c1_21, %c0_22, %c0_23] : memref<1x18x18x8xbf16, #tpu.memory_space<vmem>>, vector<1x16x16x8xbf16>
      %27 = vector.shape_cast %26 : vector<1x16x16x8xbf16> to vector<16x16x8xbf16>
      %28 = vector.shape_cast %27 : vector<16x16x8xbf16> to vector<256x8xbf16>
      %c0_24 = arith.constant 0 : index
      %c1_25 = arith.constant 1 : index
      %c1_26 = arith.constant 1 : index
      %c0_27 = arith.constant 0 : index
      %29 = vector.load %arg2[%c0_24, %c1_25, %c1_26, %c0_27] : memref<1x18x18x8xbf16, #tpu.memory_space<vmem>>, vector<1x16x16x8xbf16>
      %30 = vector.shape_cast %29 : vector<1x16x16x8xbf16> to vector<16x16x8xbf16>
      %31 = vector.shape_cast %30 : vector<16x16x8xbf16> to vector<256x8xbf16>
      %c0_28 = arith.constant 0 : index
      %c1_29 = arith.constant 1 : index
      %c2_30 = arith.constant 2 : index
      %c0_31 = arith.constant 0 : index
      %32 = vector.load %arg2[%c0_28, %c1_29, %c2_30, %c0_31] : memref<1x18x18x8xbf16, #tpu.memory_space<vmem>>, vector<1x16x16x8xbf16>
      %33 = vector.shape_cast %32 : vector<1x16x16x8xbf16> to vector<16x16x8xbf16>
      %34 = vector.shape_cast %33 : vector<16x16x8xbf16> to vector<256x8xbf16>
      %c0_32 = arith.constant 0 : index
      %c2_33 = arith.constant 2 : index
      %c0_34 = arith.constant 0 : index
      %c0_35 = arith.constant 0 : index
      %35 = vector.load %arg2[%c0_32, %c2_33, %c0_34, %c0_35] : memref<1x18x18x8xbf16, #tpu.memory_space<vmem>>, vector<1x16x16x8xbf16>
      %36 = vector.shape_cast %35 : vector<1x16x16x8xbf16> to vector<16x16x8xbf16>
      %37 = vector.shape_cast %36 : vector<16x16x8xbf16> to vector<256x8xbf16>
      %c0_36 = arith.constant 0 : index
      %c2_37 = arith.constant 2 : index
      %c1_38 = arith.constant 1 : index
      %c0_39 = arith.constant 0 : index
      %38 = vector.load %arg2[%c0_36, %c2_37, %c1_38, %c0_39] : memref<1x18x18x8xbf16, #tpu.memory_space<vmem>>, vector<1x16x16x8xbf16>
      %39 = vector.shape_cast %38 : vector<1x16x16x8xbf16> to vector<16x16x8xbf16>
      %40 = vector.shape_cast %39 : vector<16x16x8xbf16> to vector<256x8xbf16>
      %c0_40 = arith.constant 0 : index
      %c2_41 = arith.constant 2 : index
      %c2_42 = arith.constant 2 : index
      %c0_43 = arith.constant 0 : index
      %41 = vector.load %arg2[%c0_40, %c2_41, %c2_42, %c0_43] : memref<1x18x18x8xbf16, #tpu.memory_space<vmem>>, vector<1x16x16x8xbf16>
      %42 = vector.shape_cast %41 : vector<1x16x16x8xbf16> to vector<16x16x8xbf16>
      %43 = vector.shape_cast %42 : vector<16x16x8xbf16> to vector<256x8xbf16>
      %cst_44 = arith.constant 0.000000e+00 : bf16
      %44 = vector.broadcast %cst_44 : bf16 to vector<256x56xbf16>
      %45 = tpu.concatenate %19, %22, %25, %28, %31, %34, %37, %40, %43, %44 in 1 : vector<256x8xbf16>, vector<256x8xbf16>, vector<256x8xbf16>, vector<256x8xbf16>, vector<256x8xbf16>, vector<256x8xbf16>, vector<256x8xbf16>, vector<256x8xbf16>, vector<256x8xbf16>, vector<256x56xbf16> -> vector<256x128xbf16>
      %c0_45 = arith.constant 0 : index
      %c0_46 = arith.constant 0 : index
      %46 = vector.load %arg6[%c0_45, %c0_46] : memref<256x128xbf16, #tpu.memory_space<vmem>>, vector<256x128xbf16>
      tpu.vector_store %arg6[%c0_45, %c0_46], %45 {strides = array<i32>} : memref<256x128xbf16, #tpu.memory_space<vmem>>, vector<256x128xbf16>,
    } else {
    }
    %c0 = arith.constant 0 : index
    %c0_1 = arith.constant 0 : index
    %3 = vector.load %arg6[%c0, %c0_1] : memref<256x128xbf16, #tpu.memory_space<vmem>>, vector<256x128xbf16>
    %c0_2 = arith.constant 0 : index
    %c0_3 = arith.constant 0 : index
    %4 = vector.load %arg3[%c0_2, %c0_3] : memref<128x128xbf16, #tpu.memory_space<vmem>>, vector<128x128xbf16>
    %cst = arith.constant dense<0.000000e+00> : vector<256x128xf32>
    %5 = tpu.matmul %3, %4, %cst {dimension_numbers = #tpu.dot_dimension_numbers<[1], [0], [0], [1], [0, 0, 1, 1], [], []>} : vector<256x128xbf16>, vector<128x128xbf16>, vector<256x128xf32> -> vector<256x128xf32>
    %c0_4 = arith.constant 0 : index
    %c0_5 = arith.constant 0 : index
    %6 = vector.load %arg4[%c0_4, %c0_5] : memref<1x128xf32, #tpu.memory_space<vmem>>, vector<1x128xf32>
    %7 = vector.shape_cast %6 : vector<1x128xf32> to vector<128xf32>
    %8 = vector.shape_cast %7 : vector<128xf32> to vector<1x128xf32>
    %9 = vector.broadcast %8 : vector<1x128xf32> to vector<256x128xf32>
    %10 = arith.addf %5, %9 : vector<256x128xf32>
    %cst_6 = arith.constant 0.000000e+00 : f32
    %11 = vector.broadcast %cst_6 : f32 to vector<256x128xf32>
    %12 = arith.maximumf %10, %11 : vector<256x128xf32>
    %13 = arith.truncf %12 : vector<256x128xf32> to vector<256x128xbf16>
    %c0_7 = arith.constant 0 : index
    %c0_8 = arith.constant 0 : index
    %c0_9 = arith.constant 0 : index
    %14 = vector.load %arg5[%c0_7, %c0_8, %c0_9] : memref<1x256x128xbf16, #tpu.memory_space<vmem>>, vector<1x256x128xbf16>
    %15 = vector.shape_cast %14 : vector<1x256x128xbf16> to vector<256x128xbf16>
    %16 = vector.shape_cast %13 : vector<256x128xbf16> to vector<1x256x128xbf16>
    tpu.vector_store %arg5[%c0_7, %c0_8, %c0_9], %16 {strides = array<i32>} : memref<1x256x128xbf16, #tpu.memory_space<vmem>>, vector<1x256x128xbf16>,
    return
  }
  func.func @transform_0(%arg0: i32, %arg1: i32) -> (i32, i32, i32, i32) {
    %c0_i32 = arith.constant 0 : i32
    %c0_i32_0 = arith.constant 0 : i32
    %c0_i32_1 = arith.constant 0 : i32
    %c0_i32_2 = arith.constant 0 : i32
    return %arg0, %c0_i32, %c0_i32_0, %c0_i32_1 : i32, i32, i32, i32
  }
  func.func @transform_1(%arg0: i32, %arg1: i32) -> (i32, i32) {
    %c0_i32 = arith.constant 0 : i32
    %c0_i32_0 = arith.constant 0 : i32
    return %c0_i32, %arg1 : i32, i32
  }
  func.func @transform_2(%arg0: i32, %arg1: i32) -> (i32, i32) {
    %c0_i32 = arith.constant 0 : i32
    %c0_i32_0 = arith.constant 0 : i32
    return %c0_i32, %arg1 : i32, i32
  }
  func.func @transform_3(%arg0: i32, %arg1: i32) -> (i32, i32, i32) {
    %c0_i32 = arith.constant 0 : i32
    %c0_i32_0 = arith.constant 0 : i32
    return %arg0, %c0_i32, %arg1 : i32, i32, i32
  }
}

</mosaic_0001>

<bundles_post_ra>
// kernel: conv3x3_bn_relu.1
= control target key start
LH: loop header
LB: loop body
LE: loop exit
PB: predicated region body
PF: predicated region fallthrough
CT: control target
= control target key end

     0   :  { %s4444_s12 = smov 0   ;;  %s4446_s13 = smov 0   ;;  %s6315_s0 = inlined_call_operand.vmem [shape: bf16[2,18,18,8], index: 0, kind: input, shape index: {}]   ;;  %s6316_s1 = inlined_call_operand.vmem [shape: bf16[128,128], index: 1, kind: input, shape index: {}]   ;;  %s6317_s2 = inlined_call_operand.vmem [shape: f32[1,128], index: 2, kind: input, shape index: {}]   ;;  %s6318_s3 = inlined_call_operand.vmem [shape: bf16[2,256,128], index: 3, kind: output, shape index: {}]  }
   0x1   :  { %s4448_s14 = smov 0  }
   0x2 LB: > { %s25_s15 = sadd.s32 1, %s4410_s13  ;;  %p3676_p0 = scmp.ge.s32.totalorder %s4414_s14, 1  ;;  %s4414_s14 = sphi %s4448_s14, %s13_s14   ;;  %s4410_s13 = sphi %s4446_s13, %s6324_s13   ;;  %s4406_s12 = sphi %s4444_s12, %s6323_s12  }
   0x3   : > { %p27_p1 = scmp.ge.s32.totalorder %s25_s15, 2  ;;  %p168_p2 = scmp.lt.s32.totalorder %s4414_s14, 3 }
   0x5   : > { %s6326_s15 = smov (%p27_p1, %s25_s15), 0  ;;  %p169_p3 = pnand %p3676_p0, %p168_p2 }
   0x6   : > { %p202_p4 = scmp.lt.s32.totalorder (!%p169_p3), %s4406_s12, 1  ;;  %vm726_vm0 = vcmask (!%p169_p3), 1042432   ;;  %vm727_vm1 = vcmask (!%p169_p3), 1046532   ;;  %s4416_s20 = smov (!%p169_p3), 24   ;;  %vm275_vm3 = vsmask.f32 (!%p169_p3), 3328 }
   0x7   : > { %172 = sbr.rel (%p169_p3) target bundleno = 678 (0x2a6), region = 32  ;;  %vm4499_vm2 = vmor (!%p169_p3), %vm726_vm0, %vm727_vm1  ;;  %vm276_vm4 = vsmask.f32 (!%p169_p3), 7440  ;;  %s4417_s21 = smov (!%p169_p3), 16   ;;  %vm2795_vm6 = vcmask (!%p169_p3), 64512   ;;  %vm2844_vm7 = vcmask (!%p169_p3), 130048  }
   0x8   : > { %vm4557_vm5 = vmor (!%p169_p3), %vm275_vm3, %vm276_vm4  ;;  %s4418_s22 = smov (!%p169_p3), 8   ;;  %s4419_s23 = smov (!%p169_p3), 32   ;;  %vm2877_vm8 = vcmask (!%p169_p3), 195584   ;;  %vm2910_vm9 = vcmask (!%p169_p3), 261120   ;;  %vm2943_vm10 = vcmask (!%p169_p3), 326656   ;;  %vm2976_vm11 = vcmask (!%p169_p3), 392192  }
   0x9   : > { %s4420_s24 = smov (!%p169_p3), 40   ;;  %s4421_s25 = smov (!%p169_p3), 48   ;;  %vm3009_vm12 = vcmask (!%p169_p3), 457728   ;;  %vm3042_vm13 = vcmask (!%p169_p3), 523264   ;;  %vm3075_vm14 = vcmask (!%p169_p3), 588800  }
   0xa   : > { %s4422_s30 = smov (!%p169_p3), 56   ;;  %s4423_s6 = smov (!%p169_p3), 64  }
   0xe   : > { %s6328_s12 = smov (!%p202_p4, %s4406_s12), 1 }
   0xf   : > { %s4275_s16 = smul.u32 216, %s6328_s12 }
  0x11   : > { %s4468_s19 = scalar_lea.vmem %s6315_s0, %s4275_s16 }
  0x12   : > { %v3712_v0 = vld [vmem:[%s4468_s19 + $0x6c] sm:$0xf]  ;;  %v4472_v1 = vld [vmem:[%s4468_s19 + $0x70] sm:$0xf]  ;;  %v4485_v12 = vld [vmem:[%s4468_s19 + $0x64] sm:$0xf] }
  0x13   : > { %v3696_v2 = vld [vmem:[%s4468_s19 + $0xc] sm:$0xf]  ;;  %v1092_v3 = vshll.u32 %v4472_v1, 16  ;;  %v1096_v4 = vshrl.u32 %v4472_v1, 16  ;;  %v3912_v5 = vcombine.low %v3712_v0, %v4472_v1  ;;  %v1083_v6 = vshrl.u32 %v3712_v0, 16 }
  0x14   : > { %v4479_v7 = vld [vmem:[%s4468_s19 + $0x10] sm:$0xf]  ;;  %v1086_v8 = vshll.u32 %v3712_v0, 16  ;;  %v891_v15 = vshrl.u32 %v3696_v2, 16  ;;  %v894_v16 = vshll.u32 %v3696_v2, 16  ;;  %v787_v22 = vrot.slane %v4485_v12, 5 }
  0x15   : > { %v900_v9 = vshll.u32 %v4479_v7, 16  ;;  %v904_v10 = vshrl.u32 %v4479_v7, 16  ;;  %v3904_v11 = vcombine.low %v3696_v2, %v4479_v7  ;;  %v4487_v13 = vrot.slane %v1096_v4, 4  ;;  %2363 = vrot.lane.b32.xlu1 %v3912_v5, %s4416_s20  ;;  %v4491_v17 = vld [vmem:[%s4468_s19 + $0x68] sm:$0x1] }
  0x16   : > { %v1085_v14 = vrot.slane %v1083_v6, 4  ;;  %v1088_v18 = vrot.slane %v1086_v8, 5  ;;  %v670_v20 = vld [vmem:[%s4468_s19 + $0x60] sm:$0xe]  ;;  %v790_v23 = vrot.slane %v4491_v17, 5  ;;  %v893_v24 = vrot.slane %v891_v15, 4 }
  0x17   : > { %v4493_v19 = vrot.slane %v904_v10, 4  ;;  %2347 = vrot.lane.b32.xlu0 %v3904_v11, %s4416_s20  ;;  %v896_v25 = vrot.slane %v894_v16, 5  ;;  %v3688_v26 = vrot.slane %v670_v20, 9  ;;  %v4506_v27 = vld [vmem:[%s4468_s19 + $0x4] sm:$0xf]  ;;  %v480_v28 = vshll.u32 %v4485_v12, 16 }
  0x18   : > { %v1089_v29 = vor.u32 %v1088_v18, %v1085_v14  ;;  %v789_v30 = vrot.slane %v787_v22, 4  ;;  %v4510_v31 = vld [vmem:[%s4468_s19 + $0x8] sm:$0x1]  ;;  %v662_v32 = vld [vmem:[%s4468_s19] sm:$0xe]  ;;  %v731_v33 = vrot.slane %v4506_v27, 5 }
  0x19   : > { %v897_v34 = vor.u32 %v896_v25, %v893_v24  ;;  %v788_v35 = vsel %vm4499_vm2, %v3688_v26, %v787_v22  ;;  %v3680_v36 = vrot.slane %v662_v32, 9  ;;  %v734_v37 = vrot.slane %v4510_v31, 5  ;;  %v4518_v38 = vld [vmem:[%s4468_s19 + $0x70] sm:$0xf]  ;;  %v4521_v39 = vld [vmem:[%s4468_s19 + $0x74] sm:$0x1] }
  0x1a   : > { %v4523_v40 = vrot.slane %v1089_v29, 4  ;;  %v791_v41 = vsel %vm4499_vm2, %v789_v30, %v790_v23  ;;  %v733_v42 = vrot.slane %v731_v33, 4  ;;  %v671_v43 = vld [vmem:[%s4468_s19 + $0x6c] sm:$0xe]  ;;  %v794_v44 = vrot.slane %v4518_v38, 5 }
  0x1b   : > { %v4529_v45 = vrot.slane %v897_v34, 4  ;;  %v3896_v46 = vcombine.low %v788_v35, %v791_v41  ;;  %v732_v47 = vsel %vm4499_vm2, %v3680_v36, %v731_v33  ;;  %v3689_v48 = vrot.slane %v671_v43, 9  ;;  %v230_v49 = vld [vmem:[%s4468_s19 + $0x10] sm:$0xf]  ;;  %v260_v50 = vld [vmem:[%s4468_s19 + $0x14] sm:$0x1] }
  0x1c   : > { %v735_v51 = vsel %vm4499_vm2, %v733_v42, %v734_v37  ;;  %v796_v52 = vrot.slane %v794_v44, 4  ;;  %v797_v53 = vrot.slane %v4521_v39, 5  ;;  %v663_v54 = vld [vmem:[%s4468_s19 + $0xc] sm:$0xe]  ;;  %v738_v55 = vrot.slane %v230_v49, 5 }
  0x1d   : > { %2267 = vrot.lane.b32.xlu1 %v3896_v46, %s4417_s21  ;;  %v3888_v56 = vcombine.low %v732_v47, %v735_v51  ;;  %v795_v57 = vsel %vm4499_vm2, %v3689_v48, %v794_v44  ;;  %v3681_v58 = vrot.slane %v663_v54, 9  ;;  %v741_v59 = vrot.slane %v260_v50, 5  ;;  %v229_v60 = vld [vmem:[%s4468_s19 + $0xc] sm:$0xf]  ;;  %v227_v2 = vld [vmem:[%s4468_s19] sm:$0xf] }
  0x1e   : > { %v798_v61 = vsel %vm4499_vm2, %v796_v52, %v797_v53  ;;  %v740_v62 = vrot.slane %v738_v55, 4  ;;  %v303_v63 = vshrl.u32 %v229_v60, 16  ;;  %v306_v0 = vshll.u32 %v229_v60, 16  ;;  %v245_v23 = vld [vmem:[%s4468_s19 + $0x6c] sm:$0xf] }
  0x1f   : > { %2251 = vrot.lane.b32.xlu0 %v3888_v56, %s4417_s21  ;;  %v3897_v4 = vcombine.low %v795_v57, %v798_v61  ;;  %v739_v5 = vsel %vm4499_vm2, %v3681_v58, %v738_v55  ;;  %v312_v6 = vshll.u32 %v230_v49, 16  ;;  %v316_v8 = vshrl.u32 %v230_v49, 16  ;;  %v243_v52 = vld [vmem:[%s4468_s19 + $0x60] sm:$0xf] }
  0x20   : > { %v742_v10 = vsel %vm4499_vm2, %v740_v62, %v741_v59  ;;  %v305_v11 = vrot.slane %v303_v63, 4  ;;  %v308_v14 = vrot.slane %v306_v0, 5  ;;  %v322_v15 = vshll.u32 %v260_v50, 16 }
  0x21   : > { %2269 = vrot.lane.b32.xlu1 %v3897_v4, %s4417_s21  ;;  %v3889_v16 = vcombine.low %v739_v5, %v742_v10  ;;  %v314_v18 = vrot.slane %v312_v6, 5  ;;  %v318_v20 = vrot.slane %v316_v8, 4  ;;  %v279_v22 = vshrl.u32 %v227_v2, 16  ;;  %v3714_v4 = vld [vmem:[%s4468_s19 + $0x78] sm:$0xf] }
  0x22   : > { %v309_v24 = vor.u32 %v308_v14, %v305_v11  ;;  %v324_v25 = vrot.slane %v322_v15, 5  ;;  %v282_v26 = vshll.u32 %v227_v2, 16  ;;  %v288_v29 = vshll.u32 %v4506_v27, 16  ;;  %v4580_v10 = vld [vmem:[%s4468_s19 + $0x7c] sm:$0xf] }
  0x23   : > { %2253 = vrot.lane.b32.xlu0 %v3889_v16, %s4417_s21  ;;  %v319_v32 = vor.u32 %v318_v20, %v314_v18  ;;  %v281_v33 = vrot.slane %v279_v22, 4  ;;  %v292_v34 = vshrl.u32 %v4506_v27, 16  ;;  %v298_v35 = vshll.u32 %v4510_v31, 16 }
  0x24   : > { %v310_v36 = vrot.slane %v309_v24, 4  ;;  %v284_v37 = vrot.slane %v282_v26, 5  ;;  %v290_v41 = vrot.slane %v288_v29, 5  ;;  %v495_v42 = vshrl.u32 %v245_v23, 16 }
  0x25   : > { %v320_v43 = vrot.slane %v319_v32, 4  ;;  %v294_v44 = vrot.slane %v292_v34, 4  ;;  %v300_v46 = vrot.slane %v298_v35, 5  ;;  %v498_v47 = vshll.u32 %v245_v23, 16  ;;  %v4587_v23 = vld [vmem:[%s4468_s19 + $0x18] sm:$0xf] }
  0x26   : > { %v315_v48 = vsel %vm4557_vm5, %v310_v36, %v314_v18  ;;  %v285_v49 = vor.u32 %v284_v37, %v281_v33  ;;  %v497_v50 = vrot.slane %v495_v42, 4  ;;  %v504_v51 = vshll.u32 %v4518_v38, 16  ;;  %v4598_v35 = vld [vmem:[%s4468_s19 + $0x74] sm:$0x1] }
  0x27   : > { %v325_v27 = vsel %vm4557_vm5, %v320_v43, %v324_v25  ;;  %v295_v31 = vor.u32 %v294_v44, %v290_v41  ;;  %v500_v53 = vrot.slane %v498_v47, 5  ;;  %v508_v54 = vshrl.u32 %v4518_v38, 16 }
  0x28   : > { %v3873_v55 = vcombine.low %v315_v48, %v325_v27  ;;  %v286_v56 = vrot.slane %v285_v49, 4  ;;  %v506_v57 = vrot.slane %v504_v51, 5  ;;  %v514_v58 = vshll.u32 %v4521_v39, 16  ;;  %v4608_v48 = vld [vmem:[%s4468_s19 + $0x14] sm:$0x1] }
  0x29   : > { %v296_v59 = vrot.slane %v295_v31, 4  ;;  %v501_v60 = vor.u32 %v500_v53, %v497_v50  ;;  %v510_v61 = vrot.slane %v508_v54, 4  ;;  %v471_v62 = vshrl.u32 %v243_v52, 16 }
  0x2a   : > { %2173 = vrot.lane.b32.xlu1 %v3873_v55, %s4418_s22  ;;  %v291_v63 = vsel %vm4557_vm5, %v286_v56, %v290_v41  ;;  %v516_v0 = vrot.slane %v514_v58, 5  ;;  %v474_v2 = vshll.u32 %v243_v52, 16  ;;  %v482_v38 = vrot.slane %v480_v28, 5 }
  0x2b   : > { %v301_v39 = vsel %vm4557_vm5, %v296_v59, %v300_v46  ;;  %v502_v5 = vrot.slane %v501_v60, 4  ;;  %v511_v6 = vor.u32 %v510_v61, %v506_v57  ;;  %v473_v8 = vrot.slane %v471_v62, 4 }
  0x2c   : > { %v3872_v11 = vcombine.low %v291_v63, %v301_v39  ;;  %v476_v14 = vrot.slane %v474_v2, 5  ;;  %v484_v15 = vshrl.u32 %v4485_v12, 16  ;;  %v490_v16 = vshll.u32 %v4491_v17, 16  ;;  %v4592_v12 = vld [vmem:[%s4468_s19 + $0x1c] sm:$0xf] }
  0x2d   : > { %v507_v28 = vsel %vm4557_vm5, %v502_v5, %v506_v57  ;;  %v512_v18 = vrot.slane %v511_v6, 4  ;;  %v1107_v20 = vshrl.u32 %v3714_v4, 16  ;;  %v1110_v22 = vshll.u32 %v3714_v4, 16  ;;  %v4624_v57 = vld [vmem:[%s4468_s19 + $0x80] sm:$0x1] }
  0x2e   : > { %2171 = vrot.lane.b32.xlu0 %v3872_v11, %s4418_s22  ;;  %v477_v24 = vor.u32 %v476_v14, %v473_v8  ;;  %v486_v25 = vrot.slane %v484_v15, 4  ;;  %v492_v26 = vrot.slane %v490_v16, 5  ;;  %v1120_v29 = vshrl.u32 %v4580_v10, 16  ;;  %v3752_v8 = vld [vmem:[%s4468_s19 + $0x6c] sm:$0xe] }
  0x2f   : > { %v517_v17 = vsel %vm4557_vm5, %v512_v18, %v516_v0  ;;  %v1109_v32 = vrot.slane %v1107_v20, 4  ;;  %v1112_v33 = vrot.slane %v1110_v22, 5  ;;  %v3913_v34 = vcombine.low %v3714_v4, %v4580_v10  ;;  %v4633_v0 = vld [vmem:[%s4468_s19 + $0x20] sm:$0x1] }
  0x30   : > { %v3881_v36 = vcombine.low %v507_v28, %v517_v17  ;;  %v478_v37 = vrot.slane %v477_v24, 4  ;;  %v487_v41 = vor.u32 %v486_v25, %v482_v38  ;;  %v915_v42 = vshrl.u32 %v4587_v23, 16  ;;  %v3744_v28 = vld [vmem:[%s4468_s19 + $0xc] sm:$0xe]  ;;  %v3753_v17 = vld [vmem:[%s4468_s19 + $0x78] sm:$0xe] }
  0x31   : > { %v918_v43 = vshll.u32 %v4587_v23, 16  ;;  %v928_v44 = vshrl.u32 %v4592_v12, 16  ;;  %v3905_v46 = vcombine.low %v4587_v23, %v4592_v12  ;;  %v1094_v47 = vrot.slane %v1092_v3, 5 }
  0x32   : > { %2189 = vrot.lane.b32.xlu1 %v3881_v36, %s4418_s22  ;;  %v483_v49 = vsel %vm4557_vm5, %v478_v37, %v482_v38  ;;  %v488_v50 = vrot.slane %v487_v41, 4  ;;  %v917_v51 = vrot.slane %v915_v42, 4  ;;  %v1102_v52 = vshll.u32 %v4598_v35, 16 }
  0x33   : > { %v920_v27 = vrot.slane %v918_v43, 5  ;;  %v1095_v31 = vsel %vm4557_vm5, %v4523_v40, %v1094_v47  ;;  %v1099_v53 = vor.u32 %v4487_v13, %v1094_v47  ;;  %v902_v3 = vrot.slane %v900_v9, 5  ;;  %v3745_v47 = vld [vmem:[%s4468_s19 + $0x18] sm:$0xe] }
  0x34   : > { %v493_v54 = vsel %vm4557_vm5, %v488_v50, %v492_v26  ;;  %v1104_v55 = vrot.slane %v1102_v52, 5  ;;  %v910_v56 = vshll.u32 %v4608_v48, 16  ;;  %v1113_v58 = vor.u32 %v1112_v33, %v1109_v32 }
  0x35   : > { %v3880_v59 = vcombine.low %v483_v49, %v493_v54  ;;  %v1100_v60 = vrot.slane %v1099_v53, 4  ;;  %v903_v40 = vsel %vm4557_vm5, %v4529_v45, %v902_v3  ;;  %v907_v13 = vor.u32 %v4493_v19, %v902_v3  ;;  %v4675_v53 = vld [vmem:[%s4468_s19 + $0x7c] sm:$0xf] }
  0x36   : > { %2365 = vrot.lane.b32.xlu1 %v3913_v34, %s4416_s20  ;;  %v912_v9 = vrot.slane %v910_v56, 5  ;;  %v1114_v61 = vrot.slane %v1113_v58, 4  ;;  %v1116_v62 = vshll.u32 %v4580_v10, 16  ;;  %v1122_v63 = vrot.slane %v1120_v29, 4  ;;  %v4682_v58 = vld [vmem:[%s4468_s19 + $0x18] sm:$0xf] }
  0x37   : > { %2187 = vrot.lane.b32.xlu0 %v3880_v59, %s4418_s22  ;;  %v1105_v2 = vsel %vm4557_vm5, %v1100_v60, %v1104_v55  ;;  %v908_v38 = vrot.slane %v907_v13, 4  ;;  %v1126_v45 = vshll.u32 %v4624_v57, 16  ;;  %v921_v19 = vor.u32 %v920_v27, %v917_v51  ;;  %v4668_v51 = vld [vmem:[%s4468_s19 + $0x78] sm:$0xf] }
  0x38   : > { %v3928_v4 = vcombine.low %v1095_v31, %v1105_v2  ;;  %v1118_v39 = vrot.slane %v1116_v62, 5  ;;  %v924_v5 = vshll.u32 %v4592_v12, 16  ;;  %v930_v6 = vrot.slane %v928_v44, 4 }
  0x39   : > { %v913_v11 = vsel %vm4557_vm5, %v908_v38, %v912_v9  ;;  %v1128_v14 = vrot.slane %v1126_v45, 5  ;;  %v922_v15 = vrot.slane %v921_v19, 4  ;;  %v934_v16 = vshll.u32 %v4633_v0, 16  ;;  %v4688_v9 = vld [vmem:[%s4468_s19 + $0x1c] sm:$0xf] }
  0x3a   : > { %2443 = vrot.lane.b32.xlu1 %v3928_v4, %s4419_s23  ;;  %v3920_v18 = vcombine.low %v903_v40, %v913_v11  ;;  %v1119_v20 = vsel %vm4557_vm5, %v1114_v61, %v1118_v39  ;;  %v1123_v22 = vor.u32 %v1122_v63, %v1118_v39  ;;  %v926_v23 = vrot.slane %v924_v5, 5  ;;  %v4703_v19 = vld [vmem:[%s4468_s19 + $0x88] sm:$0xf] }
  0x3b   : > { %2349 = vrot.lane.b32.xlu0 %v3905_v46, %s4416_s20  ;;  %v936_v24 = vrot.slane %v934_v16, 5  ;;  %v3768_v25 = vrot.slane %v3752_v8, 9  ;;  %v1396_v26 = vrot.slane %v4472_v1, 5  ;;  %v1399_v29 = vrot.slane %v4598_v35, 5  ;;  %v4710_v8 = vld [vmem:[%s4468_s19 + $0x24] sm:$0xf] }
  0x3c   : > { %v1124_v32 = vrot.slane %v1123_v22, 4  ;;  %v927_v33 = vsel %vm4557_vm5, %v922_v15, %v926_v23  ;;  %v931_v34 = vor.u32 %v930_v6, %v926_v23  ;;  %v3760_v36 = vrot.slane %v3744_v28, 9  ;;  %v4719_v28 = vld [vmem:[%s4468_s19 + $0x28] sm:$0xf] }
  0x3d   : > { %v1397_v37 = vsel %vm4499_vm2, %v3768_v25, %v1396_v26  ;;  %v1398_v41 = vrot.slane %v1396_v26, 4  ;;  %v1340_v42 = vrot.slane %v4479_v7, 5  ;;  %v1343_v43 = vrot.slane %v4608_v48, 5 }
  0x3e   : > { %v1129_v1 = vsel %vm4557_vm5, %v1124_v32, %v1128_v14  ;;  %v932_v35 = vrot.slane %v931_v34, 4  ;;  %v3769_v44 = vrot.slane %v3753_v17, 9  ;;  %v1403_v46 = vrot.slane %v4580_v10, 5 }
  0x3f   : > { %2427 = vrot.lane.b32.xlu0 %v3920_v18, %s4419_s23  ;;  %v3929_v49 = vcombine.low %v1119_v20, %v1129_v1  ;;  %v1400_v50 = vsel %vm4499_vm2, %v1398_v41, %v1399_v29  ;;  %v1341_v7 = vsel %vm4499_vm2, %v3760_v36, %v1340_v42  ;;  %v1342_v48 = vrot.slane %v1340_v42, 4 }
  0x40   : > { %v937_v52 = vsel %vm4557_vm5, %v932_v35, %v936_v24  ;;  %v3944_v27 = vcombine.low %v1397_v37, %v1400_v50  ;;  %v1404_v10 = vsel %vm4499_vm2, %v3769_v44, %v1403_v46  ;;  %v1405_v31 = vrot.slane %v1403_v46, 4  ;;  %v4724_v24 = vld [vmem:[%s4468_s19 + $0x80] sm:$0x1] }
  0x41   : > { %2445 = vrot.lane.b32.xlu1 %v3929_v49, %s4419_s23  ;;  %v3921_v3 = vcombine.low %v927_v33, %v937_v52  ;;  %v1344_v54 = vsel %vm4499_vm2, %v1342_v48, %v1343_v43  ;;  %v1406_v55 = vrot.slane %v4624_v57, 5  ;;  %v3761_v56 = vrot.slane %v3745_v47, 9  ;;  %v4735_v37 = vld [vmem:[%s4468_s19 + $0x20] sm:$0x1] }
  0x42   : > { %v3936_v59 = vcombine.low %v1341_v7, %v1344_v54  ;;  %v1347_v60 = vrot.slane %v4592_v12, 5  ;;  %v1350_v40 = vrot.slane %v4633_v0, 5  ;;  %v1692_v13 = vshrl.u32 %v4668_v51, 16  ;;  %v4698_v12 = vld [vmem:[%s4468_s19 + $0x84] sm:$0xf] }
  0x43   : > { %2429 = vrot.lane.b32.xlu0 %v3921_v3, %s4419_s23  ;;  %v1407_v61 = vsel %vm4499_vm2, %v1405_v31, %v1406_v55  ;;  %v1695_v57 = vshll.u32 %v4668_v51, 16  ;;  %v1705_v62 = vshrl.u32 %v4675_v53, 16  ;;  %v3960_v63 = vcombine.low %v4668_v51, %v4675_v53  ;;  %v4330_v3 = vld [vmem:[%s6316_s1] sm:$0xff]  }
  0x44   : > { %v3945_v0 = vcombine.low %v1404_v10, %v1407_v61  ;;  %v1348_v2 = vsel %vm4499_vm2, %v3761_v56, %v1347_v60  ;;  %v1349_v38 = vrot.slane %v1347_v60, 4  ;;  %v1694_v45 = vrot.slane %v1692_v13, 4  ;;  %4211 = vmatprep.subr.bf16.mxu0 %v4330_v3  ;;  %4259 = vmatprep.subr.bf16.mxu1 %v4330_v3 }
  0x45   : > { %2523 = vrot.lane.b32.xlu1 %v3944_v27, %s4420_s24  ;;  %v1697_v4 = vrot.slane %v1695_v57, 5  ;;  %v1500_v39 = vshrl.u32 %v4682_v58, 16  ;;  %v1503_v5 = vshll.u32 %v4682_v58, 16  ;;  %v1513_v6 = vshrl.u32 %v4688_v9, 16  ;;  %v4744_v27 = vld [vmem:[%s4468_s19 + $0x8c] sm:$0x1]  ;;  %4212 = vmatpush3.bf16.msra.mxu0 %v4330_v3 }
  0x46   : > { %v1351_v11 = vsel %vm4499_vm2, %v1349_v38, %v1350_v40  ;;  %v3952_v14 = vcombine.low %v4682_v58, %v4688_v9  ;;  %v1716_v15 = vshrl.u32 %v4698_v12, 16  ;;  %v1719_v16 = vshll.u32 %v4698_v12, 16  ;;  %4267 = vmatpush3.bf16.msra.mxu1 %v4330_v3 }
  0x47   : > { %2507 = vrot.lane.b32.xlu0 %v3936_v59, %s4420_s24  ;;  %v3937_v18 = vcombine.low %v1348_v2, %v1351_v11  ;;  %v1502_v20 = vrot.slane %v1500_v39, 4  ;;  %v1505_v22 = vrot.slane %v1503_v5, 5  ;;  %v1729_v23 = vshrl.u32 %v4703_v19, 16  ;;  %v4333_v11 = vld [vmem:[%s6316_s1 + $0x8] sm:$0xff]  }
  0x48   : > { %v1718_v25 = vrot.slane %v1716_v15, 4  ;;  %v1721_v26 = vrot.slane %v1719_v16, 5  ;;  %v3961_v29 = vcombine.low %v4698_v12, %v4703_v19  ;;  %v1524_v17 = vshrl.u32 %v4710_v8, 16  ;;  %4213 = vmatprep.subr.bf16.mxu0 %v4333_v11  ;;  %4260 = vmatprep.subr.bf16.mxu1 %v4333_v11 }
  0x49   : > { %2525 = vrot.lane.b32.xlu1 %v3945_v0, %s4420_s24  ;;  %v1527_v32 = vshll.u32 %v4710_v8, 16  ;;  %v1537_v33 = vshrl.u32 %v4719_v28, 16  ;;  %v3953_v34 = vcombine.low %v4710_v8, %v4719_v28  ;;  %v1698_v36 = vor.u32 %v1697_v4, %v1694_v45  ;;  %v3832_v4 = vld [vmem:[%s4468_s19 + $0x78] sm:$0xe]  ;;  %4214 = vmatpush3.bf16.msra.mxu0 %v4333_v11 }
  0x4a   : > { %v1526_v41 = vrot.slane %v1524_v17, 4  ;;  %v1701_v42 = vshll.u32 %v4675_v53, 16  ;;  %v1707_v43 = vrot.slane %v1705_v62, 4  ;;  %v1711_v1 = vshll.u32 %v4724_v24, 16  ;;  %v4757_v62 = vld [vmem:[%s4468_s19 + $0x2c] sm:$0x1]  ;;  %4268 = vmatpush3.bf16.msra.mxu1 %v4333_v11 }
  0x4b   : > { %2509 = vrot.lane.b32.xlu0 %v3937_v18, %s4420_s24  ;;  %v1529_v35 = vrot.slane %v1527_v32, 5  ;;  %v1699_v44 = vrot.slane %v1698_v36, 4  ;;  %v1506_v46 = vor.u32 %v1505_v22, %v1502_v20  ;;  %v1509_v47 = vshll.u32 %v4688_v9, 16  ;;  %v3824_v20 = vld [vmem:[%s4468_s19 + $0x18] sm:$0xe] }
  0x4c   : > { %v1703_v49 = vrot.slane %v1701_v42, 5  ;;  %v1713_v50 = vrot.slane %v1711_v1, 5  ;;  %v1515_v7 = vrot.slane %v1513_v6, 4  ;;  %v1519_v48 = vshll.u32 %v4735_v37, 16  ;;  %v4784_v1 = vld [vmem:[%s4468_s19 + $0x7c] sm:$0xf] }
  0x4d   : > { %2619 = vrot.lane.b32.xlu1 %v3960_v63, %s4421_s25  ;;  %v1507_v51 = vrot.slane %v1506_v46, 4  ;;  %v1511_v52 = vrot.slane %v1509_v47, 5  ;;  %v1722_v10 = vor.u32 %v1721_v26, %v1718_v25  ;;  %v1725_v31 = vshll.u32 %v4703_v19, 16  ;;  %v3825_v11 = vld [vmem:[%s4468_s19 + $0x24] sm:$0xe] }
  0x4e   : > { %v1704_v54 = vsel %vm4557_vm5, %v1699_v44, %v1703_v49  ;;  %v1708_v55 = vor.u32 %v1707_v43, %v1703_v49  ;;  %v1521_v56 = vrot.slane %v1519_v48, 5  ;;  %v1731_v58 = vrot.slane %v1729_v23, 4  ;;  %v4795_v49 = vld [vmem:[%s4468_s19 + $0x80] sm:$0x1] }
  0x4f   : > { %2603 = vrot.lane.b32.xlu0 %v3952_v14, %s4421_s25  ;;  %v1512_v59 = vsel %vm4557_vm5, %v1507_v51, %v1511_v52  ;;  %v1516_v60 = vor.u32 %v1515_v7, %v1511_v52  ;;  %v1723_v40 = vrot.slane %v1722_v10, 4  ;;  %v1727_v13 = vrot.slane %v1725_v31, 5  ;;  %v231_v7 = vld [vmem:[%s4468_s19 + $0x18] sm:$0xf]  ;;  %v4803_v10 = vld [vmem:[%s4468_s19 + $0x1c] sm:$0xf] }
  0x50   : > { %v1709_v61 = vrot.slane %v1708_v55, 4  ;;  %v1735_v57 = vshll.u32 %v4744_v27, 16  ;;  %v1530_v63 = vor.u32 %v1529_v35, %v1526_v41  ;;  %v1533_v12 = vshll.u32 %v4719_v28, 16 }
  0x51   : > { %2621 = vrot.lane.b32.xlu1 %v3961_v29, %s4421_s25  ;;  %v1517_v0 = vrot.slane %v1516_v60, 4  ;;  %v1728_v2 = vsel %vm4557_vm5, %v1723_v40, %v1727_v13  ;;  %v1732_v38 = vor.u32 %v1731_v58, %v1727_v13  ;;  %v1539_v45 = vrot.slane %v1537_v33, 4  ;;  %v247_v29 = vld [vmem:[%s4468_s19 + $0x78] sm:$0xf]  ;;  %v4334_v13 = vld [vmem:[%s6316_s1 + $0x10] sm:$0xff]  }
  0x52   : > { %v1714_v39 = vsel %vm4557_vm5, %v1709_v61, %v1713_v50  ;;  %v1737_v5 = vrot.slane %v1735_v57, 5  ;;  %v1531_v6 = vrot.slane %v1530_v63, 4  ;;  %v1535_v8 = vrot.slane %v1533_v12, 5  ;;  %4215 = vmatprep.subr.bf16.mxu0 %v4334_v13  ;;  %4261 = vmatprep.subr.bf16.mxu1 %v4334_v13 }
  0x53   : > { %2605 = vrot.lane.b32.xlu0 %v3953_v34, %s4421_s25  ;;  %v3976_v14 = vcombine.low %v1704_v54, %v1714_v39  ;;  %v1522_v15 = vsel %vm4557_vm5, %v1517_v0, %v1521_v56  ;;  %v1733_v16 = vrot.slane %v1732_v38, 4  ;;  %v1543_v18 = vshll.u32 %v4757_v62, 16  ;;  %v4809_v56 = vld [vmem:[%s4468_s19 + $0x20] sm:$0x1]  ;;  %v3833_v0 = vld [vmem:[%s4468_s19 + $0x84] sm:$0xe]  ;;  %4216 = vmatpush3.bf16.msra.mxu0 %v4334_v13 }
  0x54   : > { %v3968_v22 = vcombine.low %v1512_v59, %v1522_v15  ;;  %v1536_v23 = vsel %vm4557_vm5, %v1531_v6, %v1535_v8  ;;  %v1540_v25 = vor.u32 %v1539_v45, %v1535_v8  ;;  %v3848_v26 = vrot.slane %v3832_v4, 9  ;;  %4269 = vmatpush3.bf16.msra.mxu1 %v4334_v13 }
  0x55   : > { %2699 = vrot.lane.b32.xlu1 %v3976_v14, %s4422_s30  ;;  %v1738_v17 = vsel %vm4557_vm5, %v1733_v16, %v1737_v5  ;;  %v1545_v32 = vrot.slane %v1543_v18, 5  ;;  %v2005_v33 = vrot.slane %v4675_v53, 5  ;;  %v2008_v34 = vrot.slane %v4724_v24, 5  ;;  %v4335_v14 = vld [vmem:[%s6316_s1 + $0x18] sm:$0xff]  }
  0x56   : > { %v3977_v36 = vcombine.low %v1728_v2, %v1738_v17  ;;  %v1541_v41 = vrot.slane %v1540_v25, 4  ;;  %v3840_v42 = vrot.slane %v3824_v20, 9  ;;  %v1949_v43 = vrot.slane %v4688_v9, 5  ;;  %4217 = vmatprep.subr.bf16.mxu0 %v4335_v14  ;;  %4262 = vmatprep.subr.bf16.mxu1 %v4335_v14 }
  0x57   : > { %2683 = vrot.lane.b32.xlu0 %v3968_v22, %s4422_s30  ;;  %v2006_v35 = vsel %vm4499_vm2, %v3848_v26, %v2005_v33  ;;  %v2007_v53 = vrot.slane %v2005_v33, 4  ;;  %v1952_v24 = vrot.slane %v4735_v37, 5  ;;  %v519_v44 = vshrl.u32 %v247_v29, 16  ;;  %4218 = vmatpush3.bf16.msra.mxu0 %v4335_v14 }
  0x58   : > { %v1546_v46 = vsel %vm4557_vm5, %v1541_v41, %v1545_v32  ;;  %v1950_v9 = vsel %vm4499_vm2, %v3840_v42, %v1949_v43  ;;  %v1951_v47 = vrot.slane %v1949_v43, 4  ;;  %v522_v50 = vshll.u32 %v247_v29, 16  ;;  %v249_v29 = vld [vmem:[%s4468_s19 + $0x84] sm:$0xf]  ;;  %4270 = vmatpush3.bf16.msra.mxu1 %v4335_v14 }
  0x59   : > { %2701 = vrot.lane.b32.xlu1 %v3977_v36, %s4422_s30  ;;  %v3969_v48 = vcombine.low %v1536_v23, %v1546_v46  ;;  %v2009_v51 = vsel %vm4499_vm2, %v2007_v53, %v2008_v34  ;;  %v521_v37 = vrot.slane %v519_v44, 4  ;;  %v528_v52 = vshll.u32 %v4784_v1, 16  ;;  %v4336_v43 = vld [vmem:[%s6316_s1 + $0x20] sm:$0xff]   ;;  %v4846_v44 = vld [vmem:[%s4468_s19 + $0x8c] sm:$0x1] }
  0x5a   : > { %v3992_v31 = vcombine.low %v2006_v35, %v2009_v51  ;;  %v1953_v3 = vsel %vm4499_vm2, %v1951_v47, %v1952_v24  ;;  %v524_v54 = vrot.slane %v522_v50, 5  ;;  %v532_v55 = vshrl.u32 %v4784_v1, 16  ;;  %v233_v50 = vld [vmem:[%s4468_s19 + $0x24] sm:$0xf]  ;;  %4219 = vmatprep.subr.bf16.mxu0 %v4336_v43  ;;  %4263 = vmatprep.subr.bf16.mxu1 %v4336_v43 }
  0x5b   : > { %2685 = vrot.lane.b32.xlu0 %v3969_v48, %s4422_s30  ;;  %v3984_v58 = vcombine.low %v1950_v9, %v1953_v3  ;;  %v530_v59 = vrot.slane %v528_v52, 5  ;;  %v538_v60 = vshll.u32 %v4795_v49, 16  ;;  %v327_v40 = vshrl.u32 %v231_v7, 16  ;;  %v4858_v52 = vld [vmem:[%s4468_s19 + $0x28] sm:$0xf]  ;;  %4220 = vmatpush3.bf16.msra.mxu0 %v4336_v43 }
  0x5c   : > { %v525_v61 = vor.u32 %v524_v54, %v521_v37  ;;  %v534_v57 = vrot.slane %v532_v55, 4  ;;  %v330_v63 = vshll.u32 %v231_v7, 16  ;;  %v336_v12 = vshll.u32 %v4803_v10, 16  ;;  %4271 = vmatpush3.bf16.msra.mxu1 %v4336_v43  ;;  %v4345_v43 = vld [vmem:[%s6316_s1 + $0x38] sm:$0xff]  }
  0x5d   : > { %2779 = vrot.lane.b32.xlu1 %v3992_v31, %s4423_s6  ;;  %v540_v2 = vrot.slane %v538_v60, 5  ;;  %v329_v38 = vrot.slane %v327_v40, 4  ;;  %v340_v45 = vshrl.u32 %v4803_v10, 16  ;;  %v346_v4 = vshll.u32 %v4809_v56, 16 }
  0x5e   : > { %v526_v39 = vrot.slane %v525_v61, 4  ;;  %v535_v5 = vor.u32 %v534_v57, %v530_v59  ;;  %v332_v6 = vrot.slane %v330_v63, 5  ;;  %v338_v8 = vrot.slane %v336_v12, 5  ;;  %v672_v61 = vld [vmem:[%s4468_s19 + $0x78] sm:$0xe]  ;;  %v4337_v57 = vld [vmem:[%s6316_s1 + $0x28] sm:$0xff]  }
  0x5f   : > { %2763 = vrot.lane.b32.xlu0 %v3984_v58, %s4423_s6  ;;  %v342_v15 = vrot.slane %v340_v45, 4  ;;  %v348_v16 = vrot.slane %v346_v4, 5  ;;  %v3849_v18 = vrot.slane %v3833_v0, 9  ;;  %v2012_v20 = vrot.slane %v4703_v19, 5  ;;  %v4865_v58 = vld [vmem:[%s4468_s19 + $0x2c] sm:$0x1]  ;;  %4221 = vmatprep.subr.bf16.mxu0 %v4337_v57 }
  0x60   : > { %v531_v22 = vsel %vm4557_vm5, %v526_v39, %v530_v59  ;;  %v536_v23 = vrot.slane %v535_v5, 4  ;;  %v333_v25 = vor.u32 %v332_v6, %v329_v38  ;;  %v2015_v26 = vrot.slane %v4744_v27, 5  ;;  %v4838_v27 = vld [vmem:[%s4468_s19 + $0x88] sm:$0xf]  ;;  %v664_v5 = vld [vmem:[%s4468_s19 + $0x18] sm:$0xe]  ;;  %4264 = vmatprep.subr.bf16.mxu1 %v4337_v57  ;;  %4222 = vmatpush3.bf16.msra.mxu0 %v4337_v57 }
  0x61   : > { %v343_v17 = vor.u32 %v342_v15, %v338_v8  ;;  %v2013_v32 = vsel %vm4499_vm2, %v3849_v18, %v2012_v20  ;;  %v2014_v33 = vrot.slane %v2012_v20, 4  ;;  %v3841_v34 = vrot.slane %v3825_v11, 9  ;;  %v4340_v15 = vld [vmem:[%s6316_s1 + $0x30] sm:$0xff]   ;;  %4272 = vmatpush3.bf16.msra.mxu1 %v4337_v57 }
  0x62   : > { %v541_v19 = vsel %vm4557_vm5, %v536_v23, %v540_v2  ;;  %v334_v36 = vrot.slane %v333_v25, 4  ;;  %v1956_v41 = vrot.slane %v4719_v28, 5  ;;  %v1959_v42 = vrot.slane %v4757_v62, 5  ;;  %4223 = vmatprep.subr.bf16.mxu0 %v4340_v15  ;;  %4265 = vmatprep.subr.bf16.mxu1 %v4340_v15 }
  0x63   : > { %v3882_v35 = vcombine.low %v531_v22, %v541_v19  ;;  %v344_v53 = vrot.slane %v343_v17, 4  ;;  %v2016_v24 = vsel %vm4499_vm2, %v2014_v33, %v2015_v26  ;;  %v543_v46 = vshrl.u32 %v249_v29, 16  ;;  %v673_v17 = vld [vmem:[%s4468_s19 + $0x84] sm:$0xe] }
  0x64   : > { %v339_v28 = vsel %vm4557_vm5, %v334_v36, %v338_v8  ;;  %v3993_v62 = vcombine.low %v2013_v32, %v2016_v24  ;;  %v1957_v9 = vsel %vm4499_vm2, %v3841_v34, %v1956_v41  ;;  %v1958_v47 = vrot.slane %v1956_v41, 4  ;;  %4224 = vmatpush3.bf16.msra.mxu0 %v4340_v15 }
  0x65   : > { %2191 = vrot.lane.b32.xlu1 %v3882_v35, %s4418_s22  ;;  %v349_v7 = vsel %vm4557_vm5, %v344_v53, %v348_v16  ;;  %v545_v48 = vrot.slane %v543_v46, 4  ;;  %v546_v51 = vshll.u32 %v249_v29, 16  ;;  %v552_v37 = vshll.u32 %v4838_v27, 16  ;;  %4273 = vmatpush3.bf16.msra.mxu1 %v4340_v15 }
  0x66   : > { %v3874_v31 = vcombine.low %v339_v28, %v349_v7  ;;  %v1960_v3 = vsel %vm4499_vm2, %v1958_v47, %v1959_v42  ;;  %v556_v54 = vshrl.u32 %v4838_v27, 16  ;;  %v562_v55 = vshll.u32 %v4846_v44, 16  ;;  %v665_v42 = vld [vmem:[%s4468_s19 + $0x24] sm:$0xe]  ;;  %4225 = vmatprep.subr.bf16.mxu0 %v4345_v43  ;;  %4266 = vmatprep.subr.bf16.mxu1 %v4345_v43 }
  0x67   : > { %v3985_v59 = vcombine.low %v1957_v9, %v1960_v3  ;;  %v548_v60 = vrot.slane %v546_v51, 5  ;;  %v554_v40 = vrot.slane %v552_v37, 5  ;;  %v351_v13 = vshrl.u32 %v233_v50, 16  ;;  %v4903_v9 = vld [vmem:[%s4468_s19 + $0x84] sm:$0xf] }
  0x68   : > { %2175 = vrot.lane.b32.xlu0 %v3874_v31, %s4418_s22  ;;  %v558_v63 = vrot.slane %v556_v54, 4  ;;  %v564_v12 = vrot.slane %v562_v55, 5  ;;  %v354_v0 = vshll.u32 %v233_v50, 16  ;;  %v360_v2 = vshll.u32 %v4858_v52, 16  ;;  %v4911_v51 = vld [vmem:[%s4468_s19 + $0x88] sm:$0xf]  ;;  %4226 = vmatpush3.bf16.msra.mxu0 %v4345_v43 }
  0x69   : > { %2781 = vrot.lane.b32.xlu1 %v3993_v62, %s4423_s6  ;;  %v549_v38 = vor.u32 %v548_v60, %v545_v48  ;;  %v353_v45 = vrot.slane %v351_v13, 4  ;;  %v364_v4 = vshrl.u32 %v4858_v52, 16  ;;  %v370_v39 = vshll.u32 %v4865_v58, 16  ;;  %v4918_v55 = vld [vmem:[%s4468_s19 + $0x24] sm:$0xf]  ;;  %4274 = vmatpush3.bf16.msra.mxu1 %v4345_v43 }
  0x6a   : > { %v559_v6 = vor.u32 %v558_v63, %v554_v40  ;;  %v356_v8 = vrot.slane %v354_v0, 5  ;;  %v362_v11 = vrot.slane %v360_v2, 5  ;;  %v3690_v14 = vrot.slane %v672_v61, 9  ;;  %v4929_v61 = vld [vmem:[%s4468_s19 + $0x28] sm:$0xf] }
  0x6b   : > { %v550_v16 = vrot.slane %v549_v38, 4  ;;  %v366_v18 = vrot.slane %v364_v4, 4  ;;  %v372_v20 = vrot.slane %v370_v39, 5  ;;  %v801_v22 = vrot.slane %v4784_v1, 5  ;;  %v3718_v2 = vld [vmem:[%s4468_s19 + $0x90] sm:$0xf] }
  0x6c   : > { %2765 = vrot.lane.b32.xlu0 %v3985_v59, %s4423_s6  ;;  %v560_v23 = vrot.slane %v559_v6, 4  ;;  %v357_v25 = vor.u32 %v356_v8, %v353_v45  ;;  %v804_v26 = vrot.slane %v4795_v49, 5  ;;  %v3682_v29 = vrot.slane %v664_v5, 9  ;;  %v4939_v38 = vld [vmem:[%s4468_s19 + $0x94] sm:$0xf] }
  0x6d   : > { %v555_v32 = vsel %vm4557_vm5, %v550_v16, %v554_v40  ;;  %v367_v33 = vor.u32 %v366_v18, %v362_v11  ;;  %v802_v34 = vsel %vm4499_vm2, %v3690_v14, %v801_v22  ;;  %v803_v19 = vrot.slane %v801_v22, 4  ;;  %v4945_v6 = vld [vmem:[%s4468_s19 + $0x30] sm:$0xf]  ;;  %v4948_v8 = vld [vmem:[%s4468_s19 + $0x34] sm:$0xf] }
  0x6e   : > { %v565_v1 = vsel %vm4557_vm5, %v560_v23, %v564_v12  ;;  %v358_v36 = vrot.slane %v357_v25, 4  ;;  %v745_v41 = vrot.slane %v4803_v10, 5  ;;  %v748_v49 = vrot.slane %v4809_v56, 5 }
  0x6f   : > { %v3883_v35 = vcombine.low %v555_v32, %v565_v1  ;;  %v368_v53 = vrot.slane %v367_v33, 4  ;;  %v805_v24 = vsel %vm4499_vm2, %v803_v19, %v804_v26  ;;  %v3691_v46 = vrot.slane %v673_v17, 9  ;;  %v4961_v32 = vld [vmem:[%s4468_s19 + $0x8c] sm:$0x1] }
  0x70   : > { %v363_v28 = vsel %vm4557_vm5, %v358_v36, %v362_v11  ;;  %v3898_v10 = vcombine.low %v802_v34, %v805_v24  ;;  %v746_v56 = vsel %vm4499_vm2, %v3682_v29, %v745_v41  ;;  %v747_v62 = vrot.slane %v745_v41, 4  ;;  %v4966_v36 = vld [vmem:[%s4468_s19 + $0x2c] sm:$0x1] }
  0x71   : > { %2193 = vrot.lane.b32.xlu1 %v3883_v35, %s4418_s22  ;;  %v373_v47 = vsel %vm4557_vm5, %v368_v53, %v372_v20  ;;  %v808_v50 = vrot.slane %v4838_v27, 5  ;;  %v811_v7 = vrot.slane %v4846_v44, 5  ;;  %v3683_v48 = vrot.slane %v665_v42, 9 }
  0x72   : > { %v3875_v37 = vcombine.low %v363_v28, %v373_v47  ;;  %v749_v31 = vsel %vm4499_vm2, %v747_v62, %v748_v49  ;;  %v752_v3 = vrot.slane %v4858_v52, 5  ;;  %v755_v54 = vrot.slane %v4865_v58, 5 }
  0x73   : > { %v3890_v59 = vcombine.low %v746_v56, %v749_v31  ;;  %v809_v27 = vsel %vm4499_vm2, %v3691_v46, %v808_v50  ;;  %v810_v44 = vrot.slane %v808_v50, 4  ;;  %v1131_v60 = vshrl.u32 %v4903_v9, 16 }
  0x74   : > { %2177 = vrot.lane.b32.xlu0 %v3875_v37, %s4418_s22  ;;  %v753_v52 = vsel %vm4499_vm2, %v3683_v48, %v752_v3  ;;  %v754_v58 = vrot.slane %v752_v3, 4  ;;  %v1134_v40 = vshll.u32 %v4903_v9, 16  ;;  %v1144_v13 = vshrl.u32 %v4911_v51, 16 }
  0x75   : > { %2271 = vrot.lane.b32.xlu1 %v3898_v10, %s4417_s21  ;;  %v812_v57 = vsel %vm4499_vm2, %v810_v44, %v811_v7  ;;  %v1133_v63 = vrot.slane %v1131_v60, 4  ;;  %v3914_v12 = vcombine.low %v4903_v9, %v4911_v51  ;;  %v939_v0 = vshrl.u32 %v4918_v55, 16  ;;  %v4975_v7 = vld [vmem:[%s4468_s19 + $0x98] sm:$0x1] }
  0x76   : > { %v3899_v45 = vcombine.low %v809_v27, %v812_v57  ;;  %v756_v4 = vsel %vm4499_vm2, %v754_v58, %v755_v54  ;;  %v1136_v39 = vrot.slane %v1134_v40, 5  ;;  %v942_v5 = vshll.u32 %v4918_v55, 16  ;;  %v4986_v58 = vld [vmem:[%s4468_s19 + $0x38] sm:$0x1] }
  0x77   : > { %v3891_v11 = vcombine.low %v753_v52, %v756_v4  ;;  %v941_v14 = vrot.slane %v939_v0, 4  ;;  %v952_v15 = vshrl.u32 %v4929_v61, 16  ;;  %v3906_v16 = vcombine.low %v4918_v55, %v4929_v61 }
  0x78   : > { %2255 = vrot.lane.b32.xlu0 %v3890_v59, %s4417_s21  ;;  %v944_v18 = vrot.slane %v942_v5, 5  ;;  %v1155_v20 = vshrl.u32 %v3718_v2, 16  ;;  %v1158_v22 = vshll.u32 %v3718_v2, 16  ;;  %v1168_v23 = vshrl.u32 %v4939_v38, 16 }
  0x79   : > { %2273 = vrot.lane.b32.xlu1 %v3899_v45, %s4417_s21  ;;  %v3915_v25 = vcombine.low %v3718_v2, %v4939_v38  ;;  %v963_v26 = vshrl.u32 %v4945_v6, 16  ;;  %v966_v29 = vshll.u32 %v4945_v6, 16  ;;  %v976_v17 = vshrl.u32 %v4948_v8, 16  ;;  %v3754_v2 = vld [vmem:[%s4468_s19 + $0x84] sm:$0xe] }
  0x7a   : > { %v1157_v33 = vrot.slane %v1155_v20, 4  ;;  %v1160_v34 = vrot.slane %v1158_v22, 5  ;;  %v3907_v19 = vcombine.low %v4945_v6, %v4948_v8  ;;  %v1137_v1 = vor.u32 %v1136_v39, %v1133_v63 }
  0x7b   : > { %v965_v41 = vrot.slane %v963_v26, 4  ;;  %v968_v49 = vrot.slane %v966_v29, 5  ;;  %v1140_v42 = vshll.u32 %v4911_v51, 16  ;;  %v1146_v43 = vrot.slane %v1144_v13, 4 }
  0x7c   : > { %2257 = vrot.lane.b32.xlu0 %v3891_v11, %s4417_s21  ;;  %v1138_v35 = vrot.slane %v1137_v1, 4  ;;  %v1150_v53 = vshll.u32 %v4961_v32, 16  ;;  %v945_v24 = vor.u32 %v944_v18, %v941_v14  ;;  %v948_v46 = vshll.u32 %v4929_v61, 16 }
  0x7d   : > { %2367 = vrot.lane.b32.xlu1 %v3914_v12, %s4416_s20  ;;  %v1142_v28 = vrot.slane %v1140_v42, 5  ;;  %v954_v10 = vrot.slane %v952_v15, 4  ;;  %v958_v56 = vshll.u32 %v4966_v36, 16  ;;  %v1161_v62 = vor.u32 %v1160_v34, %v1157_v33 }
  0x7e   : > { %v1152_v9 = vrot.slane %v1150_v53, 5  ;;  %v946_v47 = vrot.slane %v945_v24, 4  ;;  %v950_v50 = vrot.slane %v948_v46, 5  ;;  %v1164_v48 = vshll.u32 %v4939_v38, 16  ;;  %v5019_v46 = vld [vmem:[%s4468_s19 + $0x90] sm:$0xf] }
  0x7f   : > { %v1143_v37 = vsel %vm4557_vm5, %v1138_v35, %v1142_v28  ;;  %v1147_v31 = vor.u32 %v1146_v43, %v1142_v28  ;;  %v960_v3 = vrot.slane %v958_v56, 5  ;;  %v1162_v54 = vrot.slane %v1161_v62, 4  ;;  %v5026_v62 = vld [vmem:[%s4468_s19 + $0x94] sm:$0xf] }
  0x80   : > { %2351 = vrot.lane.b32.xlu0 %v3906_v16, %s4416_s20  ;;  %v951_v55 = vsel %vm4557_vm5, %v946_v47, %v950_v50  ;;  %v955_v59 = vor.u32 %v954_v10, %v950_v50  ;;  %v1166_v27 = vrot.slane %v1164_v48, 5  ;;  %v1170_v44 = vrot.slane %v1168_v23, 4  ;;  %v3746_v16 = vld [vmem:[%s4468_s19 + $0x24] sm:$0xe]  ;;  %v5033_v48 = vld [vmem:[%s4468_s19 + $0x30] sm:$0xf] }
  0x81   : > { %2369 = vrot.lane.b32.xlu1 %v3915_v25, %s4416_s20  ;;  %v1148_v60 = vrot.slane %v1147_v31, 4  ;;  %v1174_v52 = vshll.u32 %v4975_v7, 16  ;;  %v969_v40 = vor.u32 %v968_v49, %v965_v41  ;;  %v972_v13 = vshll.u32 %v4948_v8, 16  ;;  %v3755_v25 = vld [vmem:[%s4468_s19 + $0x90] sm:$0xe] }
  0x82   : > { %v956_v57 = vrot.slane %v955_v59, 4  ;;  %v1167_v63 = vsel %vm4557_vm5, %v1162_v54, %v1166_v27  ;;  %v1171_v12 = vor.u32 %v1170_v44, %v1166_v27  ;;  %v978_v0 = vrot.slane %v976_v17, 4  ;;  %v3747_v49 = vld [vmem:[%s4468_s19 + $0x30] sm:$0xe]  ;;  %v5040_v54 = vld [vmem:[%s4468_s19 + $0x34] sm:$0xf] }
  0x83   : > { %v1153_v45 = vsel %vm4557_vm5, %v1148_v60, %v1152_v9  ;;  %v1176_v4 = vrot.slane %v1174_v52, 5  ;;  %v970_v39 = vrot.slane %v969_v40, 4  ;;  %v974_v5 = vrot.slane %v972_v13, 5 }
  0x84   : > { %2353 = vrot.lane.b32.xlu0 %v3907_v19, %s4416_s20  ;;  %v3930_v6 = vcombine.low %v1143_v37, %v1153_v45  ;;  %v961_v11 = vsel %vm4557_vm5, %v956_v57, %v960_v3  ;;  %v1172_v14 = vrot.slane %v1171_v12, 4  ;;  %v982_v15 = vshll.u32 %v4986_v58, 16  ;;  %v5057_v57 = vld [vmem:[%s4468_s19 + $0xa0] sm:$0xf]  ;;  %v5063_v45 = vld [vmem:[%s4468_s19 + $0x3c] sm:$0xf] }
  0x85   : > { %v3922_v18 = vcombine.low %v951_v55, %v961_v11  ;;  %v975_v20 = vsel %vm4557_vm5, %v970_v39, %v974_v5  ;;  %v979_v22 = vor.u32 %v978_v0, %v974_v5  ;;  %v3770_v23 = vrot.slane %v3754_v2, 9  ;;  %v5073_v11 = vld [vmem:[%s4468_s19 + $0x40] sm:$0xf] }
  0x86   : > { %2447 = vrot.lane.b32.xlu1 %v3930_v6, %s4419_s23  ;;  %v1177_v26 = vsel %vm4557_vm5, %v1172_v14, %v1176_v4  ;;  %v984_v29 = vrot.slane %v982_v15, 5  ;;  %v1410_v17 = vrot.slane %v4911_v51, 5  ;;  %v1413_v33 = vrot.slane %v4961_v32, 5 }
  0x87   : > { %v3931_v34 = vcombine.low %v1167_v63, %v1177_v26  ;;  %v980_v19 = vrot.slane %v979_v22, 4  ;;  %v3762_v1 = vrot.slane %v3746_v16, 9  ;;  %v1354_v41 = vrot.slane %v4929_v61, 5  ;;  %v5042_v55 = vpop.permute.xlu1 %2363 }
  0x88   : > { %2431 = vrot.lane.b32.xlu0 %v3922_v18, %s4419_s23  ;;  %v1411_v42 = vsel %vm4499_vm2, %v3770_v23, %v1410_v17  ;;  %v1412_v43 = vrot.slane %v1410_v17, 4  ;;  %v1357_v35 = vrot.slane %v4966_v36, 5  ;;  %v3771_v53 = vrot.slane %v3755_v25, 9 }
  0x89   : > { %v985_v51 = vsel %vm4557_vm5, %v980_v19, %v984_v29  ;;  %v1355_v32 = vsel %vm4499_vm2, %v3762_v1, %v1354_v41  ;;  %v1356_v24 = vrot.slane %v1354_v41, 4  ;;  %v1417_v61 = vrot.slane %v4939_v38, 5  ;;  %v5079_v22 = vpop.permute.xlu0 %2347  ;;  %v5092_v41 = vld [vmem:[%s4468_s19 + $0x38] sm:$0x1] }
  0x8a   : > { %2449 = vrot.lane.b32.xlu1 %v3931_v34, %s4419_s23  ;;  %v3923_v28 = vcombine.low %v975_v20, %v985_v51  ;;  %v1414_v36 = vsel %vm4499_vm2, %v1412_v43, %v1413_v33  ;;  %v1420_v10 = vrot.slane %v4975_v7, 5  ;;  %v3763_v56 = vrot.slane %v3747_v49, 9  ;;  %v5077_v20 = vld [vmem:[%s4468_s19 + $0x98] sm:$0x1] }
  0x8b   : > { %v3946_v9 = vcombine.low %v1411_v42, %v1414_v36  ;;  %v1358_v47 = vsel %vm4499_vm2, %v1356_v24, %v1357_v35  ;;  %v1418_v38 = vsel %vm4499_vm2, %v3771_v53, %v1417_v61  ;;  %v1419_v50 = vrot.slane %v1417_v61, 4 }
  0x8c   : > { %2433 = vrot.lane.b32.xlu0 %v3923_v28, %s4419_s23  ;;  %v3938_v37 = vcombine.low %v1355_v32, %v1358_v47  ;;  %v1361_v7 = vrot.slane %v4948_v8, 5  ;;  %v1364_v31 = vrot.slane %v4986_v58, 5  ;;  %v1740_v3 = vshrl.u32 %v5019_v46, 16  ;;  %v5051_v8 = vld [vmem:[%s4468_s19 + $0x9c] sm:$0xf] }
  0x8d   : > { %v1421_v59 = vsel %vm4499_vm2, %v1419_v50, %v1420_v10  ;;  %v1743_v27 = vshll.u32 %v5019_v46, 16  ;;  %v1753_v44 = vshrl.u32 %v5026_v62, 16  ;;  %v3962_v60 = vcombine.low %v5019_v46, %v5026_v62 }
  0x8e   : > { %2527 = vrot.lane.b32.xlu1 %v3946_v9, %s4420_s24  ;;  %v3947_v52 = vcombine.low %v1418_v38, %v1421_v59  ;;  %v1362_v58 = vsel %vm4499_vm2, %v3763_v56, %v1361_v7  ;;  %v1363_v40 = vrot.slane %v1361_v7, 4  ;;  %v1742_v13 = vrot.slane %v1740_v3, 4  ;;  %v5101_v9 = vld [vmem:[%s4468_s19 + $0xa4] sm:$0x1] }
  0x8f   : > { %v1745_v63 = vrot.slane %v1743_v27, 5  ;;  %v1548_v12 = vshrl.u32 %v5033_v48, 16  ;;  %v1551_v0 = vshll.u32 %v5033_v48, 16  ;;  %v1561_v2 = vshrl.u32 %v5040_v54, 16  ;;  %v5085_v17 = vpop.permute.xlu1 %2267 }
  0x90   : > { %2511 = vrot.lane.b32.xlu0 %v3938_v37, %s4420_s24  ;;  %v1365_v4 = vsel %vm4499_vm2, %v1363_v40, %v1364_v31  ;;  %v3954_v39 = vcombine.low %v5033_v48, %v5040_v54  ;;  %v1764_v5 = vshrl.u32 %v5051_v8, 16  ;;  %v1767_v6 = vshll.u32 %v5051_v8, 16 }
  0x91   : > { %v3939_v14 = vcombine.low %v1362_v58, %v1365_v4  ;;  %v1550_v15 = vrot.slane %v1548_v12, 4  ;;  %v1553_v16 = vrot.slane %v1551_v0, 5  ;;  %v1777_v18 = vshrl.u32 %v5057_v57, 16  ;;  %v5104_v50 = vpop.permute.xlu0 %2251  ;;  %v5116_v58 = vld [vmem:[%s4468_s19 + $0x44] sm:$0x1] }
  0x92   : > { %2529 = vrot.lane.b32.xlu1 %v3947_v52, %s4420_s24  ;;  %v1766_v23 = vrot.slane %v1764_v5, 4  ;;  %v1769_v25 = vrot.slane %v1767_v6, 5  ;;  %v3963_v26 = vcombine.low %v5051_v8, %v5057_v57  ;;  %v1572_v29 = vshrl.u32 %v5063_v45, 16 }
  0x93   : > { %v1575_v33 = vshll.u32 %v5063_v45, 16  ;;  %v1585_v34 = vshrl.u32 %v5073_v11, 16  ;;  %v3955_v19 = vcombine.low %v5063_v45, %v5073_v11  ;;  %v1746_v1 = vor.u32 %v1745_v63, %v1742_v13  ;;  %v5109_v3 = vpop.permute.xlu1 %2269  ;;  %v3834_v45 = vld [vmem:[%s4468_s19 + $0x90] sm:$0xe] }
  0x94   : > { %2513 = vrot.lane.b32.xlu0 %v3939_v14, %s4420_s24  ;;  %v1574_v49 = vrot.slane %v1572_v29, 4  ;;  %v1749_v42 = vshll.u32 %v5026_v62, 16  ;;  %v1755_v43 = vrot.slane %v1753_v44, 4  ;;  %v1759_v35 = vshll.u32 %v5077_v20, 16 }
  0x95   : > { %v1577_v53 = vrot.slane %v1575_v33, 5  ;;  %v1747_v51 = vrot.slane %v1746_v1, 4  ;;  %v1554_v32 = vor.u32 %v1553_v16, %v1550_v15  ;;  %v1557_v24 = vshll.u32 %v5040_v54, 16 }
  0x96   : > { %2623 = vrot.lane.b32.xlu1 %v3962_v60, %s4421_s25  ;;  %v1751_v61 = vrot.slane %v1749_v42, 5  ;;  %v1761_v46 = vrot.slane %v1759_v35, 5  ;;  %v1563_v28 = vrot.slane %v1561_v2, 4  ;;  %v1567_v36 = vshll.u32 %v5092_v41, 16 }
  0x97   : > { %v1555_v10 = vrot.slane %v1554_v32, 4  ;;  %v1559_v56 = vrot.slane %v1557_v24, 5  ;;  %v1770_v47 = vor.u32 %v1769_v25, %v1766_v23  ;;  %v1773_v38 = vshll.u32 %v5057_v57, 16  ;;  %v3826_v23 = vld [vmem:[%s4468_s19 + $0x30] sm:$0xe]  ;;  %v5129_v25 = vpop.permute.xlu0 %2253 }
  0x98   : > { %2607 = vrot.lane.b32.xlu0 %v3954_v39, %s4421_s25  ;;  %v1752_v48 = vsel %vm4557_vm5, %v1747_v51, %v1751_v61  ;;  %v1756_v37 = vor.u32 %v1755_v43, %v1751_v61  ;;  %v1569_v7 = vrot.slane %v1567_v36, 5  ;;  %v1779_v31 = vrot.slane %v1777_v18, 4  ;;  %v5144_v61 = vld [vmem:[%s4468_s19 + $0x94] sm:$0xf] }
  0x99   : > { %v1560_v59 = vsel %vm4557_vm5, %v1555_v10, %v1559_v56  ;;  %v1564_v27 = vor.u32 %v1563_v28, %v1559_v56  ;;  %v1771_v44 = vrot.slane %v1770_v47, 4  ;;  %v1775_v60 = vrot.slane %v1773_v38, 5  ;;  %v5154_v47 = vld [vmem:[%s4468_s19 + $0x98] sm:$0x1]  ;;  %v235_v38 = vld [vmem:[%s4468_s19 + $0x30] sm:$0xf] }
  0x9a   : > { %2625 = vrot.lane.b32.xlu1 %v3963_v26, %s4421_s25  ;;  %v1757_v8 = vrot.slane %v1756_v37, 4  ;;  %v1783_v52 = vshll.u32 %v5101_v9, 16  ;;  %v1578_v40 = vor.u32 %v1577_v53, %v1574_v49  ;;  %v1581_v13 = vshll.u32 %v5073_v11, 16 }
  0x9b   : > { %v1565_v63 = vrot.slane %v1564_v27, 4  ;;  %v1776_v12 = vsel %vm4557_vm5, %v1771_v44, %v1775_v60  ;;  %v1780_v0 = vor.u32 %v1779_v31, %v1775_v60  ;;  %v1587_v2 = vrot.slane %v1585_v34, 4  ;;  %v5162_v31 = vld [vmem:[%s4468_s19 + $0x34] sm:$0xf] }
  0x9c   : > { %2609 = vrot.lane.b32.xlu0 %v3955_v19, %s4421_s25  ;;  %v1762_v4 = vsel %vm4557_vm5, %v1757_v8, %v1761_v46  ;;  %v1785_v39 = vrot.slane %v1783_v52, 5  ;;  %v1579_v5 = vrot.slane %v1578_v40, 4  ;;  %v1583_v6 = vrot.slane %v1581_v13, 5  ;;  %v251_v19 = vld [vmem:[%s4468_s19 + $0x90] sm:$0xf]  ;;  %v5134_v1 = vpop.permute.xlu1 %2173 }
  0x9d   : > { %v3978_v14 = vcombine.low %v1752_v48, %v1762_v4  ;;  %v1570_v15 = vsel %vm4557_vm5, %v1565_v63, %v1569_v7  ;;  %v1781_v16 = vrot.slane %v1780_v0, 4  ;;  %v1591_v18 = vshll.u32 %v5116_v58, 16  ;;  %v5170_v52 = vld [vmem:[%s4468_s19 + $0x38] sm:$0x1] }
  0x9e   : > { %v3970_v26 = vcombine.low %v1560_v59, %v1570_v15  ;;  %v1584_v29 = vsel %vm4557_vm5, %v1579_v5, %v1583_v6  ;;  %v1588_v33 = vor.u32 %v1587_v2, %v1583_v6  ;;  %v3850_v34 = vrot.slane %v3834_v45, 9 }
  0x9f   : > { %2703 = vrot.lane.b32.xlu1 %v3978_v14, %s4422_s30  ;;  %v1786_v49 = vsel %vm4557_vm5, %v1781_v16, %v1785_v39  ;;  %v1593_v42 = vrot.slane %v1591_v18, 5  ;;  %v2019_v43 = vrot.slane %v5026_v62, 5  ;;  %v2022_v35 = vrot.slane %v5077_v20, 5 }
  0xa0   : > { %2687 = vrot.lane.b32.xlu0 %v3970_v26, %s4422_s30  ;;  %v3979_v53 = vcombine.low %v1776_v12, %v1786_v49  ;;  %v1589_v51 = vrot.slane %v1588_v33, 4  ;;  %v3842_v32 = vrot.slane %v3826_v23, 9  ;;  %v1963_v24 = vrot.slane %v5040_v54, 5  ;;  %v5164_v59 = vpop.permute.xlu0 %2171  ;;  %v4365_v49 = vld [vmem:[%s4468_s19 + $0xc] sm:$0xf] }
  0xa1   : > { %v2020_v46 = vsel %vm4499_vm2, %v3850_v34, %v2019_v43  ;;  %v2021_v28 = vrot.slane %v2019_v43, 4  ;;  %v1966_v36 = vrot.slane %v5092_v41, 5  ;;  %v567_v62 = vshrl.u32 %v251_v19, 16 }
  0xa2   : > { %v1594_v20 = vsel %vm4557_vm5, %v1589_v51, %v1593_v42  ;;  %v1964_v10 = vsel %vm4499_vm2, %v3842_v32, %v1963_v24  ;;  %v1965_v56 = vrot.slane %v1963_v24, 4  ;;  %v570_v54 = vshll.u32 %v251_v19, 16  ;;  %v4364_v19 = vld [vmem:[%s4468_s19 + $0x10] sm:$0xf] }
  0xa3   : > { %2705 = vrot.lane.b32.xlu1 %v3979_v53, %s4422_s30  ;;  %v3971_v48 = vcombine.low %v1584_v29, %v1594_v20  ;;  %v2023_v37 = vsel %vm4499_vm2, %v2021_v28, %v2022_v35  ;;  %v569_v41 = vrot.slane %v567_v62, 4  ;;  %v576_v7 = vshll.u32 %v5144_v61, 16  ;;  %v3835_v29 = vld [vmem:[%s4468_s19 + $0x9c] sm:$0xe]  ;;  %v4366_v20 = vld [vmem:[%s4468_s19 + $0x4] sm:$0xf] }
  0xa4   : > { %v3994_v27 = vcombine.low %v2020_v46, %v2023_v37  ;;  %v1967_v44 = vsel %vm4499_vm2, %v1965_v56, %v1966_v36  ;;  %v572_v60 = vrot.slane %v570_v54, 5  ;;  %v580_v8 = vshrl.u32 %v5144_v61, 16  ;;  %v5172_v40 = vpop.permute.xlu1 %2189  ;;  %v3827_v28 = vld [vmem:[%s4468_s19 + $0x3c] sm:$0xe] }
  0xa5   : > { %2689 = vrot.lane.b32.xlu0 %v3971_v48, %s4422_s30  ;;  %v3986_v13 = vcombine.low %v1964_v10, %v1967_v44  ;;  %v578_v63 = vrot.slane %v576_v7, 5  ;;  %v586_v12 = vshll.u32 %v5154_v47, 16  ;;  %v375_v0 = vshrl.u32 %v235_v38, 16  ;;  %v4367_v10 = vld [vmem:[%s4468_s19] sm:$0xf] }
  0xa6   : > { %v573_v2 = vor.u32 %v572_v60, %v569_v41  ;;  %v582_v45 = vrot.slane %v580_v8, 4  ;;  %v378_v4 = vshll.u32 %v235_v38, 16  ;;  %v384_v39 = vshll.u32 %v5162_v31, 16  ;;  %v253_v7 = vld [vmem:[%s4468_s19 + $0x9c] sm:$0xf] }
  0xa7   : > { %2783 = vrot.lane.b32.xlu1 %v3994_v27, %s4423_s6  ;;  %v588_v5 = vrot.slane %v586_v12, 5  ;;  %v377_v6 = vrot.slane %v375_v0, 4  ;;  %v388_v14 = vshrl.u32 %v5162_v31, 16  ;;  %v394_v15 = vshll.u32 %v5170_v52, 16  ;;  %v4368_v12 = vld [vmem:[%s4468_s19 + $0x70] sm:$0xf] }
  0xa8   : > { %v574_v16 = vrot.slane %v573_v2, 4  ;;  %v583_v18 = vor.u32 %v582_v45, %v578_v63  ;;  %v380_v23 = vrot.slane %v378_v4, 5  ;;  %v386_v26 = vrot.slane %v384_v39, 5  ;;  %v5181_v33 = vpop.permute.xlu1 %2365  ;;  %v4369_v0 = vld [vmem:[%s4468_s19 + $0x6c] sm:$0xf] }
  0xa9   : > { %2767 = vrot.lane.b32.xlu0 %v3986_v13, %s4423_s6  ;;  %v390_v34 = vrot.slane %v388_v14, 4  ;;  %v3857_v42 = vcombine.low %v4365_v49, %v4364_v19  ;;  %v5186_v43 = vpop.permute.xlu0 %2187  ;;  %v396_v24 = vrot.slane %v394_v15, 5  ;;  %v3851_v46 = vrot.slane %v3835_v29, 9  ;;  %v5218_v45 = vld [vmem:[%s4468_s19 + $0xa0] sm:$0xf] }
  0xaa   : > { %v579_v35 = vsel %vm4557_vm5, %v574_v16, %v578_v63  ;;  %v584_v53 = vrot.slane %v583_v18, 4  ;;  %v381_v51 = vor.u32 %v380_v23, %v377_v6  ;;  %v3856_v56 = vcombine.low %v4367_v10, %v4366_v20  ;;  %v4370_v15 = vld [vmem:[%s4468_s19 + $0x64] sm:$0xf]  ;;  %v4371_v16 = vld [vmem:[%s4468_s19 + $0x60] sm:$0xf] }
  0xab   : > { %v391_v32 = vor.u32 %v390_v34, %v386_v26  ;;  %v2026_v54 = vrot.slane %v5057_v57, 5  ;;  %v5198_v37 = vsel %vm2795_vm6, %v3857_v42, %v5134_v1  ;;  %v2029_v41 = vrot.slane %v5101_v9, 5  ;;  %v237_v23 = vld [vmem:[%s4468_s19 + $0x3c] sm:$0xf]  ;;  %v5237_v42 = vld [vmem:[%s4468_s19 + $0x40] sm:$0xf] }
  0xac   : > { %v589_v36 = vsel %vm4557_vm5, %v584_v53, %v588_v5  ;;  %v382_v62 = vrot.slane %v381_v51, 4  ;;  %v5204_v44 = vpop.permute.xlu1 %2443  ;;  %v3843_v13 = vrot.slane %v3827_v28, 9  ;;  %v1970_v1 = vrot.slane %v5073_v11, 5  ;;  %v5223_v5 = vld [vmem:[%s4468_s19 + $0xa4] sm:$0x1] }
  0xad   : > { %v3884_v38 = vcombine.low %v579_v35, %v589_v36  ;;  %v392_v48 = vrot.slane %v391_v32, 4  ;;  %v5202_v27 = vpop.permute.xlu0 %2349  ;;  %v2027_v60 = vsel %vm4499_vm2, %v3851_v46, %v2026_v54  ;;  %v2028_v8 = vrot.slane %v2026_v54, 4 }
  0xae   : > { %v387_v57 = vsel %vm4557_vm5, %v382_v62, %v386_v26  ;;  %v1973_v63 = vrot.slane %v5116_v58, 5  ;;  %v3865_v2 = vcombine.low %v4369_v0, %v4368_v12  ;;  %v591_v6 = vshrl.u32 %v253_v7, 16 }
  0xaf   : > { %2195 = vrot.lane.b32.xlu1 %v3884_v38, %s4418_s22  ;;  %v397_v9 = vsel %vm4557_vm5, %v392_v48, %v396_v24  ;;  %v2030_v39 = vsel %vm4499_vm2, %v2028_v8, %v2029_v41  ;;  %v1971_v11 = vsel %vm4499_vm2, %v3843_v13, %v1970_v1  ;;  %v1972_v58 = vrot.slane %v1970_v1, 4  ;;  %v5247_v24 = vld [vmem:[%s4468_s19 + $0x44] sm:$0x1] }
  0xb0   : > { %v3876_v4 = vcombine.low %v387_v57, %v397_v9  ;;  %v3995_v14 = vcombine.low %v2027_v60, %v2030_v39  ;;  %v3864_v18 = vcombine.low %v4371_v16, %v4370_v15  ;;  %v2798_v29 = vsel %vm2795_vm6, %v3856_v56, %v5164_v59 }
  0xb1   : > { %v5230_v26 = vpop.permute.xlu0 %2427  ;;  %v593_v34 = vrot.slane %v591_v6, 4  ;;  %v594_v19 = vshll.u32 %v253_v7, 16  ;;  %v600_v49 = vshll.u32 %v5218_v45, 16  ;;  %v1974_v35 = vsel %vm4499_vm2, %v1972_v58, %v1973_v63 }
  0xb2   : > { %2179 = vrot.lane.b32.xlu0 %v3876_v4, %s4418_s22  ;;  %v2825_v53 = vsel %vm2795_vm6, %v3865_v2, %v5172_v40  ;;  %v604_v51 = vshrl.u32 %v5218_v45, 16  ;;  %v610_v32 = vshll.u32 %v5223_v5, 16  ;;  %v3987_v46 = vcombine.low %v1971_v11, %v1974_v35 }
  0xb3   : > { %2785 = vrot.lane.b32.xlu1 %v3995_v14, %s4423_s6  ;;  %v5249_v59 = vpop.permute.xlu1 %2445  ;;  %v596_v28 = vrot.slane %v594_v19, 5  ;;  %v602_v36 = vrot.slane %v600_v49, 5  ;;  %v399_v62 = vshrl.u32 %v237_v23, 16  ;;  %v2822_v20 = vsel %vm2795_vm6, %v3864_v18, %v5186_v43  ;;  %v674_v43 = vld [vmem:[%s4468_s19 + $0x90] sm:$0xe] }
  0xb4   : > { %v606_v10 = vrot.slane %v604_v51, 4  ;;  %v402_v56 = vshll.u32 %v237_v23, 16  ;;  %v408_v40 = vshll.u32 %v5237_v42, 16  ;;  %v412_v41 = vshrl.u32 %v5237_v42, 16  ;;  %v666_v14 = vld [vmem:[%s4468_s19 + $0x30] sm:$0xe] }
  0xb5   : > { %v5254_v54 = vpop.permute.xlu0 %2429  ;;  %v597_v38 = vor.u32 %v596_v28, %v593_v34  ;;  %v401_v48 = vrot.slane %v399_v62, 4  ;;  %v418_v7 = vshll.u32 %v5247_v24, 16  ;;  %v612_v60 = vrot.slane %v610_v32, 5 }
  0xb6   : > { %2769 = vrot.lane.b32.xlu0 %v3987_v46, %s4423_s6  ;;  %v607_v57 = vor.u32 %v606_v10, %v602_v36  ;;  %v404_v8 = vrot.slane %v402_v56, 5  ;;  %v410_v13 = vrot.slane %v408_v40, 5  ;;  %v2846_v1 = vsel %vm2844_vm7, %v2798_v29, %v5104_v50  ;;  %v667_v56 = vld [vmem:[%s4468_s19 + $0x3c] sm:$0xe] }
  0xb7   : > { %v5260_v9 = vpop.permute.xlu1 %2523  ;;  %v2862_v63 = vsel %vm2844_vm7, %v2822_v20, %v5085_v17  ;;  %v598_v12 = vrot.slane %v597_v38, 4  ;;  %v414_v0 = vrot.slane %v412_v41, 4  ;;  %v420_v39 = vrot.slane %v418_v7, 5 }
  0xb8   : > { %v608_v2 = vrot.slane %v607_v57, 4  ;;  %v405_v4 = vor.u32 %v404_v8, %v401_v48  ;;  %v2864_v6 = vsel %vm2844_vm7, %v2825_v53, %v5109_v3  ;;  %v3692_v50 = vrot.slane %v674_v43, 9  ;;  %v5310_v48 = vld [vmem:[%s4468_s19 + $0x9c] sm:$0xf] }
  0xb9   : > { %v5269_v11 = vpop.permute.xlu0 %2507  ;;  %v603_v58 = vsel %vm4557_vm5, %v598_v12, %v602_v36  ;;  %v415_v15 = vor.u32 %v414_v0, %v410_v13  ;;  %v815_v18 = vrot.slane %v5144_v61, 5  ;;  %v818_v23 = vrot.slane %v5154_v47, 5  ;;  %v675_v36 = vld [vmem:[%s4468_s19 + $0x9c] sm:$0xe]  ;;  %v5328_v12 = vld [vmem:[%s4468_s19 + $0xa0] sm:$0xf] }
  0xba   : > { %v613_v17 = vsel %vm4557_vm5, %v608_v2, %v612_v60  ;;  %v406_v16 = vrot.slane %v405_v4, 4  ;;  %v3684_v19 = vrot.slane %v666_v14, 9  ;;  %v759_v49 = vrot.slane %v5162_v31, 5  ;;  %v3704_v43 = vld [vmem:[%s4468_s19 + $0x3c] sm:$0xf] }
  0xbb   : > { %v5277_v29 = vpop.permute.xlu1 %2525  ;;  %v3885_v3 = vcombine.low %v603_v58, %v613_v17  ;;  %v416_v34 = vrot.slane %v415_v15, 4  ;;  %v816_v53 = vsel %vm4499_vm2, %v3692_v50, %v815_v18  ;;  %v817_v51 = vrot.slane %v815_v18, 4  ;;  %v5352_v17 = vld [vmem:[%s4468_s19 + $0x40] sm:$0xf] }
  0xbc   : > { %v411_v35 = vsel %vm4557_vm5, %v406_v16, %v410_v13  ;;  %v762_v61 = vrot.slane %v5170_v52, 5  ;;  %v2848_v31 = vsel %vm2844_vm7, %v5198_v37, %v5129_v25  ;;  %v760_v46 = vsel %vm4499_vm2, %v3684_v19, %v759_v49 }
  0xbd   : > { %v5285_v32 = vpop.permute.xlu0 %2509  ;;  %2197 = vrot.lane.b32.xlu1 %v3885_v3, %s4418_s22  ;;  %v421_v47 = vsel %vm4557_vm5, %v416_v34, %v420_v39  ;;  %v761_v28 = vrot.slane %v759_v49, 4  ;;  %v2897_v52 = vsel %vm2877_vm8, %v2864_v6, %v5181_v33  ;;  %v2881_v20 = vsel %vm2877_vm8, %v2848_v31, %v5202_v27  ;;  %v3722_v6 = vld [vmem:[%s4468_s19 + $0xa8] sm:$0xf]  ;;  %v5357_v3 = vld [vmem:[%s4468_s19 + $0xac] sm:$0xf] }
  0xbe   : > { %v3877_v62 = vcombine.low %v411_v35, %v421_v47  ;;  %v819_v10 = vsel %vm4499_vm2, %v817_v51, %v818_v23  ;;  %v2895_v37 = vsel %vm2877_vm8, %v2862_v63, %v5042_v55  ;;  %v3693_v27 = vrot.slane %v675_v36, 9  ;;  %v3706_v34 = vld [vmem:[%s4468_s19 + $0x48] sm:$0xf]  ;;  %v5364_v51 = vld [vmem:[%s4468_s19 + $0x4c] sm:$0xf] }
  0xbf   : > { %v5303_v40 = vpop.permute.xlu1 %2619  ;;  %v3900_v38 = vcombine.low %v816_v53, %v819_v10  ;;  %v763_v25 = vsel %vm4499_vm2, %v761_v28, %v762_v61  ;;  %v822_v41 = vrot.slane %v5218_v45, 5  ;;  %v825_v7 = vrot.slane %v5223_v5, 5  ;;  %v5382_v10 = vld [vmem:[%s4468_s19 + $0xa4] sm:$0x1] }
  0xc0   : > { %2181 = vrot.lane.b32.xlu0 %v3877_v62, %s4418_s22  ;;  %v3892_v33 = vcombine.low %v760_v46, %v763_v25  ;;  %v2879_v60 = vsel %vm2877_vm8, %v2846_v1, %v5079_v22  ;;  %v3685_v8 = vrot.slane %v667_v56, 9  ;;  %v766_v55 = vrot.slane %v5237_v42, 5 }
  0xc1   : > { %v5315_v57 = vpop.permute.xlu0 %2603  ;;  %2275 = vrot.lane.b32.xlu1 %v3900_v38, %s4417_s21  ;;  %v769_v13 = vrot.slane %v5247_v24, 5  ;;  %v2928_v63 = vsel %vm2910_vm9, %v2895_v37, %v5204_v44  ;;  %v823_v45 = vsel %vm4499_vm2, %v3693_v27, %v822_v41  ;;  %v824_v5 = vrot.slane %v822_v41, 4 }
  0xc2   : > { %v1179_v0 = vshrl.u32 %v5310_v48, 16  ;;  %v2912_v42 = vsel %vm2910_vm9, %v2879_v60, %v5230_v26  ;;  %v767_v24 = vsel %vm4499_vm2, %v3685_v8, %v766_v55  ;;  %v768_v1 = vrot.slane %v766_v55, 4 }
  0xc3   : > { %v5331_v22 = vpop.permute.xlu1 %2621  ;;  %v1182_v44 = vshll.u32 %v5310_v48, 16  ;;  %v826_v2 = vsel %vm4499_vm2, %v824_v5, %v825_v7  ;;  %v2930_v4 = vsel %vm2910_vm9, %v2897_v52, %v5249_v59  ;;  %v2914_v39 = vsel %vm2910_vm9, %v2881_v20, %v5254_v54 }
  0xc4   : > { %2259 = vrot.lane.b32.xlu0 %v3892_v33, %s4417_s21  ;;  %v987_v26 = vshrl.u32 %v3704_v43, 16  ;;  %v3901_v58 = vcombine.low %v823_v45, %v826_v2  ;;  %v770_v15 = vsel %vm4499_vm2, %v768_v1, %v769_v13  ;;  %v1192_v50 = vshrl.u32 %v5328_v12, 16  ;;  %v5404_v1 = vld [vmem:[%s4468_s19 + $0xb0] sm:$0x1] }
  0xc5   : > { %v5346_v14 = vpop.permute.xlu0 %2605  ;;  %v990_v16 = vshll.u32 %v3704_v43, 16  ;;  %v3893_v18 = vcombine.low %v767_v24, %v770_v15  ;;  %v1181_v23 = vrot.slane %v1179_v0, 4  ;;  %v1184_v59 = vrot.slane %v1182_v44, 5 }
  0xc6   : > { %v3916_v54 = vcombine.low %v5310_v48, %v5328_v12  ;;  %2277 = vrot.lane.b32.xlu1 %v3901_v58, %s4417_s21  ;;  %v989_v49 = vrot.slane %v987_v26, 4  ;;  %v1203_v35 = vshrl.u32 %v3722_v6, 16  ;;  %v1206_v53 = vshll.u32 %v3722_v6, 16 }
  0xc7   : > { %v5360_v19 = vpop.permute.xlu1 %2699  ;;  %v992_v61 = vrot.slane %v990_v16, 5  ;;  %v1000_v47 = vshrl.u32 %v5352_v17, 16  ;;  %v3908_v31 = vcombine.low %v3704_v43, %v5352_v17  ;;  %v5371_v46 = vsel %vm2943_vm10, %v2928_v63, %v5260_v9  ;;  %v5386_v9 = vld [vmem:[%s4468_s19 + $0x44] sm:$0x1] }
  0xc8   : > { %2261 = vrot.lane.b32.xlu0 %v3893_v18, %s4417_s21  ;;  %v5377_v36 = vsel %vm2943_vm10, %v2912_v42, %v5269_v11  ;;  %v1205_v62 = vrot.slane %v1203_v35, 4  ;;  %v1216_v52 = vshrl.u32 %v5357_v3, 16  ;;  %v3917_v20 = vcombine.low %v3722_v6, %v5357_v3 }
  0xc9   : > { %v5373_v28 = vpop.permute.xlu0 %2683  ;;  %v1208_v56 = vrot.slane %v1206_v53, 5  ;;  %v1011_v38 = vshrl.u32 %v3706_v34, 16  ;;  %v1014_v25 = vshll.u32 %v3706_v34, 16  ;;  %v1024_v37 = vshrl.u32 %v5364_v51, 16 }
  0xca   : > { %2371 = vrot.lane.b32.xlu1 %v3916_v54, %s4416_s20  ;;  %v3909_v11 = vcombine.low %v3706_v34, %v5364_v51  ;;  %v5394_v33 = vsel %vm2943_vm10, %v2930_v4, %v5277_v29  ;;  %v1185_v27 = vor.u32 %v1184_v59, %v1181_v23  ;;  %v1188_v41 = vshll.u32 %v5328_v12, 16  ;;  %v5421_v34 = vld [vmem:[%s4468_s19 + $0x50] sm:$0x1] }
  0xcb   : > { %v5388_v48 = vpop.permute.xlu1 %2701  ;;  %v1194_v7 = vrot.slane %v1192_v50, 4  ;;  %v1198_v60 = vshll.u32 %v5382_v10, 16  ;;  %v993_v8 = vor.u32 %v992_v61, %v989_v49  ;;  %v996_v55 = vshll.u32 %v5352_v17, 16 }
  0xcc   : > { %2355 = vrot.lane.b32.xlu0 %v3908_v31, %s4416_s20  ;;  %v1186_v13 = vrot.slane %v1185_v27, 4  ;;  %v1190_v43 = vrot.slane %v1188_v41, 5  ;;  %v1002_v63 = vrot.slane %v1000_v47, 4  ;;  %v1006_v45 = vshll.u32 %v5386_v9, 16 }
  0xcd   : > { %v5401_v5 = vpop.permute.xlu0 %2685  ;;  %v1013_v29 = vrot.slane %v1011_v38, 4  ;;  %v1016_v0 = vrot.slane %v1014_v25, 5  ;;  %v994_v42 = vrot.slane %v993_v8, 4  ;;  %v998_v24 = vrot.slane %v996_v55, 5  ;;  %v3756_v38 = vld [vmem:[%s4468_s19 + $0x9c] sm:$0xe] }
  0xce   : > { %2373 = vrot.lane.b32.xlu1 %v3917_v20, %s4416_s20  ;;  %v5409_v44 = vsel %vm2943_vm10, %v2914_v39, %v5285_v32  ;;  %v1191_v2 = vsel %vm4557_vm5, %v1186_v13, %v1190_v43  ;;  %v1195_v4 = vor.u32 %v1194_v7, %v1190_v43  ;;  %v1200_v26 = vrot.slane %v1198_v60, 5  ;;  %v3748_v7 = vld [vmem:[%s4468_s19 + $0x3c] sm:$0xe] }
  0xcf   : > { %v999_v6 = vsel %vm4557_vm5, %v994_v42, %v998_v24  ;;  %v1003_v58 = vor.u32 %v1002_v63, %v998_v24  ;;  %v1008_v15 = vrot.slane %v1006_v45, 5  ;;  %v1209_v50 = vor.u32 %v1208_v56, %v1205_v62  ;;  %v5416_v16 = vpop.permute.xlu1 %2779  ;;  %v3757_v24 = vld [vmem:[%s4468_s19 + $0xa8] sm:$0xe] }
  0xd0   : > { %2357 = vrot.lane.b32.xlu0 %v3909_v11, %s4416_s20  ;;  %v1196_v18 = vrot.slane %v1195_v4, 4  ;;  %v1212_v32 = vshll.u32 %v5357_v3, 16  ;;  %v1218_v39 = vrot.slane %v1216_v52, 4  ;;  %v1222_v23 = vshll.u32 %v5404_v1, 16 }
  0xd1   : > { %v1004_v59 = vrot.slane %v1003_v58, 4  ;;  %v1210_v54 = vrot.slane %v1209_v50, 4  ;;  %v1017_v49 = vor.u32 %v1016_v0, %v1013_v29  ;;  %v1020_v35 = vshll.u32 %v5364_v51, 16  ;;  %v5426_v31 = vpop.permute.xlu0 %2763  ;;  %v3749_v50 = vld [vmem:[%s4468_s19 + $0x48] sm:$0xe] }
  0xd2   : > { %v1201_v53 = vsel %vm4557_vm5, %v1196_v18, %v1200_v26  ;;  %v1214_v61 = vrot.slane %v1212_v32, 5  ;;  %v1026_v47 = vrot.slane %v1024_v37, 4  ;;  %v1224_v27 = vrot.slane %v1222_v23, 5 }
  0xd3   : > { %v3932_v62 = vcombine.low %v1191_v2, %v1201_v53  ;;  %v1009_v52 = vsel %vm4557_vm5, %v1004_v59, %v1008_v15  ;;  %v1018_v20 = vrot.slane %v1017_v49, 4  ;;  %v1022_v56 = vrot.slane %v1020_v35, 5  ;;  %v5472_v49 = vld [vmem:[%s4468_s19 + $0xa8] sm:$0xf] }
  0xd4   : > { %v3924_v25 = vcombine.low %v999_v6, %v1009_v52  ;;  %v1219_v11 = vor.u32 %v1218_v39, %v1214_v61  ;;  %v1030_v41 = vshll.u32 %v5421_v34, 16  ;;  %v2994_v37 = vsel %vm2976_vm11, %v5371_v46, %v5303_v40  ;;  %v5487_v52 = vld [vmem:[%s4468_s19 + $0xac] sm:$0xf] }
  0xd5   : > { %2451 = vrot.lane.b32.xlu1 %v3932_v62, %s4419_s23  ;;  %v1215_v60 = vsel %vm4557_vm5, %v1210_v54, %v1214_v61  ;;  %v1023_v8 = vsel %vm4557_vm5, %v1018_v20, %v1022_v56  ;;  %v1027_v55 = vor.u32 %v1026_v47, %v1022_v56  ;;  %v3772_v45 = vrot.slane %v3756_v38, 9  ;;  %v3784_v20 = vld [vmem:[%s4468_s19 + $0x48] sm:$0xf] }
  0xd6   : > { %2435 = vrot.lane.b32.xlu0 %v3924_v25, %s4419_s23  ;;  %v1220_v43 = vrot.slane %v1219_v11, 4  ;;  %v1032_v63 = vrot.slane %v1030_v41, 5  ;;  %v1424_v29 = vrot.slane %v5328_v12, 5  ;;  %v1427_v40 = vrot.slane %v5382_v10, 5  ;;  %v5506_v25 = vld [vmem:[%s4468_s19 + $0xb4] sm:$0xf] }
  0xd7   : > { %v5441_v13 = vpop.permute.xlu1 %2191  ;;  %v1028_v0 = vrot.slane %v1027_v55, 4  ;;  %v3764_v46 = vrot.slane %v3748_v7, 9  ;;  %v1368_v42 = vrot.slane %v5352_v17, 5  ;;  %v1371_v6 = vrot.slane %v5386_v9, 5  ;;  %v5517_v41 = vld [vmem:[%s4468_s19 + $0x4c] sm:$0xf] }
  0xd8   : > { %v1225_v2 = vsel %vm4557_vm5, %v1220_v43, %v1224_v27  ;;  %v1425_v4 = vsel %vm4499_vm2, %v3772_v45, %v1424_v29  ;;  %v1426_v26 = vrot.slane %v1424_v29, 4  ;;  %v3773_v39 = vrot.slane %v3757_v24, 9  ;;  %v5524_v55 = vld [vmem:[%s4468_s19 + $0xb8] sm:$0xf]  ;;  %v3786_v43 = vld [vmem:[%s4468_s19 + $0x54] sm:$0xf] }
  0xd9   : > { %v3933_v12 = vcombine.low %v1215_v60, %v1225_v2  ;;  %v1033_v10 = vsel %vm4557_vm5, %v1028_v0, %v1032_v63  ;;  %v1369_v17 = vsel %vm4499_vm2, %v3764_v46, %v1368_v42  ;;  %v1370_v15 = vrot.slane %v1368_v42, 4  ;;  %v5535_v2 = vld [vmem:[%s4468_s19 + $0x58] sm:$0xf] }
  0xda   : > { %v5453_v58 = vpop.permute.xlu0 %2175  ;;  %v3925_v18 = vcombine.low %v1023_v8, %v1033_v10  ;;  %v1428_v32 = vsel %vm4499_vm2, %v1426_v26, %v1427_v40  ;;  %v2978_v9 = vsel %vm2976_vm11, %v5377_v36, %v5315_v57  ;;  %v2996_v23 = vsel %vm2976_vm11, %v5394_v33, %v5331_v22 }
  0xdb   : > { %2453 = vrot.lane.b32.xlu1 %v3933_v12, %s4419_s23  ;;  %v3948_v59 = vcombine.low %v1425_v4, %v1428_v32  ;;  %v1372_v54 = vsel %vm4499_vm2, %v1370_v15, %v1371_v6  ;;  %v5474_v35 = vpop.permute.xlu1 %2781  ;;  %v1431_v57 = vrot.slane %v5357_v3, 5  ;;  %v1434_v36 = vrot.slane %v5404_v1, 5 }
  0xdc   : > { %2437 = vrot.lane.b32.xlu0 %v3925_v18, %s4419_s23  ;;  %v3940_v53 = vcombine.low %v1369_v17, %v1372_v54  ;;  %v3765_v61 = vrot.slane %v3749_v50, 9  ;;  %v2980_v22 = vsel %vm2976_vm11, %v5409_v44, %v5346_v14  ;;  %v3027_v33 = vsel %vm3009_vm12, %v2994_v37, %v5360_v19  ;;  %v5544_v50 = vld [vmem:[%s4468_s19 + $0xb0] sm:$0x1] }
  0xdd   : > { %v1375_v47 = vrot.slane %v5364_v51, 5  ;;  %v1378_v62 = vrot.slane %v5421_v34, 5  ;;  %v1432_v3 = vsel %vm4499_vm2, %v3773_v39, %v1431_v57  ;;  %v1433_v1 = vrot.slane %v1431_v57, 4 }
  0xde   : > { %v1788_v56 = vshrl.u32 %v5472_v49, 16  ;;  %v1791_v14 = vshll.u32 %v5472_v49, 16  ;;  %v5494_v44 = vpop.permute.xlu0 %2765  ;;  %v3011_v19 = vsel %vm3009_vm12, %v2978_v9, %v5373_v28  ;;  %v5503_v38 = vsel %vm3009_vm12, %v2996_v23, %v5388_v48 }
  0xdf   : > { %2531 = vrot.lane.b32.xlu1 %v3948_v59, %s4420_s24  ;;  %v1376_v51 = vsel %vm4499_vm2, %v3765_v61, %v1375_v47  ;;  %v1377_v34 = vrot.slane %v1375_v47, 4  ;;  %v1435_v11 = vsel %vm4499_vm2, %v1433_v1, %v1434_v36  ;;  %v5513_v27 = vsel %vm3009_vm12, %v2980_v22, %v5401_v5  ;;  %v4372_v47 = vld [vmem:[%s4468_s19 + $0x78] sm:$0xf] }
  0xe0   : > { %2515 = vrot.lane.b32.xlu0 %v3940_v53, %s4420_s24  ;;  %v1801_v28 = vshrl.u32 %v5487_v52, 16  ;;  %v1596_v7 = vshrl.u32 %v3784_v20, 16  ;;  %v3949_v37 = vcombine.low %v1432_v3, %v1435_v11  ;;  %v3964_v60 = vcombine.low %v5472_v49, %v5487_v52 }
  0xe1   : > { %v1379_v48 = vsel %vm4499_vm2, %v1377_v34, %v1378_v62  ;;  %v1599_v8 = vshll.u32 %v3784_v20, 16  ;;  %v1790_v45 = vrot.slane %v1788_v56, 4  ;;  %v1793_v29 = vrot.slane %v1791_v14, 5  ;;  %v4373_v62 = vld [vmem:[%s4468_s19 + $0x7c] sm:$0xf] }
  0xe2   : > { %v3941_v5 = vcombine.low %v1376_v51, %v1379_v48  ;;  %v1812_v0 = vshrl.u32 %v5506_v25, 16  ;;  %v1598_v40 = vrot.slane %v1596_v7, 4  ;;  %v1609_v46 = vshrl.u32 %v5517_v41, 16 }
  0xe3   : > { %v5527_v63 = vpop.permute.xlu1 %2193  ;;  %2533 = vrot.lane.b32.xlu1 %v3949_v37, %s4420_s24  ;;  %v3956_v42 = vcombine.low %v3784_v20, %v5517_v41  ;;  %v1815_v24 = vshll.u32 %v5506_v25, 16  ;;  %v1601_v4 = vrot.slane %v1599_v8, 5  ;;  %v1825_v26 = vshrl.u32 %v5524_v55, 16  ;;  %v5578_v37 = vld [vmem:[%s4468_s19 + $0xbc] sm:$0x1] }
  0xe4   : > { %2517 = vrot.lane.b32.xlu0 %v3941_v5, %s4420_s24  ;;  %v3965_v6 = vcombine.low %v5506_v25, %v5524_v55  ;;  %v1620_v12 = vshrl.u32 %v3786_v43, 16  ;;  %v1814_v17 = vrot.slane %v1812_v0, 4  ;;  %v1623_v15 = vshll.u32 %v3786_v43, 16 }
  0xe5   : > { %v1817_v32 = vrot.slane %v1815_v24, 5  ;;  %v1633_v39 = vshrl.u32 %v5535_v2, 16  ;;  %v3044_v9 = vsel %vm3042_vm13, %v3011_v19, %v5426_v31  ;;  %v3060_v23 = vsel %vm3042_vm13, %v3027_v33, %v5416_v16  ;;  %v5561_v16 = vld [vmem:[%s4468_s19 + $0x50] sm:$0x1] }
  0xe6   : > { %v5541_v10 = vpop.permute.xlu0 %2177  ;;  %v1622_v59 = vrot.slane %v1620_v12, 4  ;;  %v3957_v54 = vcombine.low %v3786_v43, %v5535_v2  ;;  %4227 = vmatprep.mubr.msk.bf16.mxu0 %vm3075_vm14, %v3044_v9  ;;  %v1794_v49 = vor.u32 %v1793_v29, %v1790_v45  ;;  %v1797_v53 = vshll.u32 %v5487_v52, 16  ;;  %4243 = vmatprep.mubr.msk.bf16.mxu1 %vm3075_vm14, %v3060_v23  ;;  %v3836_v12 = vld [vmem:[%s4468_s19 + $0xa8] sm:$0xe] }
  0xe7   : > { %v5546_v18 = vpop.permute.xlu1 %2271  ;;  %2627 = vrot.lane.b32.xlu1 %v3964_v60, %s4421_s25  ;;  %v1803_v31 = vrot.slane %v1801_v28, 4  ;;  %v1807_v57 = vshll.u32 %v5544_v50, 16  ;;  %v1602_v36 = vor.u32 %v1601_v4, %v1598_v40  ;;  %v1605_v61 = vshll.u32 %v5517_v41, 16 }
  0xe8   : > { %2611 = vrot.lane.b32.xlu0 %v3956_v42, %s4421_s25  ;;  %v1625_v33 = vrot.slane %v1623_v15, 5  ;;  %v3866_v20 = vcombine.low %v4372_v47, %v4373_v62  ;;  %v1795_v3 = vrot.slane %v1794_v49, 4  ;;  %v1799_v1 = vrot.slane %v1797_v53, 5 }
  0xe9   : > { %v1809_v14 = vrot.slane %v1807_v57, 5  ;;  %v1603_v19 = vrot.slane %v1602_v36, 4  ;;  %v1607_v51 = vrot.slane %v1605_v61, 5  ;;  %v1611_v34 = vrot.slane %v1609_v46, 4  ;;  %v4375_v57 = vld [vmem:[%s4468_s19 + $0x1c] sm:$0xf] }
  0xea   : > { %v5564_v22 = vpop.permute.xlu0 %2255  ;;  %v1800_v25 = vsel %vm4557_vm5, %v1795_v3, %v1799_v1  ;;  %v1804_v11 = vor.u32 %v1803_v31, %v1799_v1  ;;  %v1615_v28 = vshll.u32 %v5561_v16, 16  ;;  %v3062_v7 = vsel %vm3042_vm13, %v5503_v38, %v5474_v35 }
  0xeb   : > { %v5568_v56 = vpop.permute.xlu1 %2273  ;;  %2629 = vrot.lane.b32.xlu1 %v3965_v6, %s4421_s25  ;;  %v1608_v48 = vsel %vm4557_vm5, %v1603_v19, %v1607_v51  ;;  %v1612_v60 = vor.u32 %v1611_v34, %v1607_v51  ;;  %v3046_v8 = vsel %vm3042_vm13, %v5513_v27, %v5494_v44  ;;  %v1818_v43 = vor.u32 %v1817_v32, %v1814_v17  ;;  %v5595_v44 = vld [vmem:[%s4468_s19 + $0x5c] sm:$0x1]  ;;  %v4376_v19 = vld [vmem:[%s4468_s19 + $0x84] sm:$0xf]  ;;  %v4377_v51 = vld [vmem:[%s4468_s19 + $0x88] sm:$0xf] }
  0xec   : > { %2613 = vrot.lane.b32.xlu0 %v3957_v54, %s4421_s25  ;;  %v1805_v45 = vrot.slane %v1804_v11, 4  ;;  %v1617_v29 = vrot.slane %v1615_v28, 5  ;;  %v1821_v35 = vshll.u32 %v5524_v55, 16  ;;  %v1827_v38 = vrot.slane %v1825_v26, 4  ;;  %4228 = vmatmul.mubr.msk.bf16.vlgmr.msra.gmra.mrb[0].mxu0 %vm3075_vm14, %v3046_v8 }
  0xed   : > { %4244 = vmatmul.mubr.msk.bf16.vlgmr.msra.gmra.mrb[0].mxu1 %vm3075_vm14, %v3062_v7  ;;  %v1613_v40 = vrot.slane %v1612_v60, 4  ;;  %v1819_v46 = vrot.slane %v1818_v43, 4  ;;  %v1831_v42 = vshll.u32 %v5578_v37, 16  ;;  %v1626_v27 = vor.u32 %v1625_v33, %v1622_v59  ;;  %v255_v60 = vld [vmem:[%s4468_s19 + $0xa8] sm:$0xf] }
  0xee   : > { %v5586_v5 = vpop.permute.xlu0 %2257  ;;  %v1810_v24 = vsel %vm4557_vm5, %v1805_v45, %v1809_v14  ;;  %v1823_v4 = vrot.slane %v1821_v35, 5  ;;  %v1629_v26 = vshll.u32 %v5535_v2, 16  ;;  %v1635_v6 = vrot.slane %v1633_v39, 4  ;;  %v4374_v39 = vld [vmem:[%s4468_s19 + $0x18] sm:$0xf] }
  0xef   : > { %v5591_v0 = vpop.permute.xlu1 %2367  ;;  %v3980_v17 = vcombine.low %v1800_v25, %v1810_v24  ;;  %v1618_v15 = vsel %vm4557_vm5, %v1613_v40, %v1617_v29  ;;  %v1627_v32 = vrot.slane %v1626_v27, 4  ;;  %v1833_v59 = vrot.slane %v1831_v42, 5  ;;  %v5635_v29 = vld [vmem:[%s4468_s19 + $0xac] sm:$0xf]  ;;  %v4379_v42 = vld [vmem:[%s4468_s19 + $0x28] sm:$0xf] }
  0xf0   : > { %v3972_v23 = vcombine.low %v1608_v48, %v1618_v15  ;;  %v1828_v54 = vor.u32 %v1827_v38, %v1823_v4  ;;  %v1631_v49 = vrot.slane %v1629_v26, 5  ;;  %v5609_v31 = vsel %vm2795_vm6, %v3866_v20, %v5441_v13  ;;  %v3828_v20 = vld [vmem:[%s4468_s19 + $0x48] sm:$0xe] }
  0xf1   : > { %v3858_v36 = vcombine.low %v4374_v39, %v4375_v57  ;;  %2707 = vrot.lane.b32.xlu1 %v3980_v17, %s4422_s30  ;;  %v1639_v61 = vshll.u32 %v5595_v44, 16  ;;  %v3852_v33 = vrot.slane %v3836_v12, 9  ;;  %v1824_v47 = vsel %vm4557_vm5, %v1819_v46, %v1823_v4  ;;  %v4378_v46 = vld [vmem:[%s4468_s19 + $0x24] sm:$0xf]  ;;  %v5648_v4 = vld [vmem:[%s4468_s19 + $0xb0] sm:$0x1] }
  0xf2   : > { %v5603_v9 = vpop.permute.xlu0 %2351  ;;  %2691 = vrot.lane.b32.xlu0 %v3972_v23, %s4422_s30  ;;  %v1829_v62 = vrot.slane %v1828_v54, 4  ;;  %v1636_v3 = vor.u32 %v1635_v6, %v1631_v49  ;;  %v2033_v13 = vrot.slane %v5487_v52, 5  ;;  %v1632_v1 = vsel %vm4557_vm5, %v1627_v32, %v1631_v49  ;;  %v5667_v39 = vld [vmem:[%s4468_s19 + $0x4c] sm:$0xf]  ;;  %v5670_v57 = vld [vmem:[%s4468_s19 + $0x50] sm:$0x1] }
  0xf3   : > { %v5605_v53 = vpop.permute.xlu1 %2369  ;;  %v1641_v14 = vrot.slane %v1639_v61, 5  ;;  %v3867_v34 = vcombine.low %v4376_v19, %v4377_v51  ;;  %v2036_v25 = vrot.slane %v5544_v50, 5  ;;  %v3844_v43 = vrot.slane %v3828_v20, 9 }
  0xf4   : > { %v1834_v28 = vsel %vm4557_vm5, %v1829_v62, %v1833_v59  ;;  %v1637_v7 = vrot.slane %v1636_v3, 4  ;;  %v2034_v52 = vsel %vm4499_vm2, %v3852_v33, %v2033_v13  ;;  %v2035_v48 = vrot.slane %v2033_v13, 4 }
  0xf5   : > { %v3981_v8 = vcombine.low %v1824_v47, %v1834_v28  ;;  %v1977_v45 = vrot.slane %v5517_v41, 5  ;;  %v1980_v50 = vrot.slane %v5561_v16, 5  ;;  %v2804_v38 = vsel %vm2795_vm6, %v3858_v36, %v5453_v58  ;;  %v239_v41 = vld [vmem:[%s4468_s19 + $0x48] sm:$0xf]  ;;  %v3837_v28 = vld [vmem:[%s4468_s19 + $0xb4] sm:$0xe] }
  0xf6   : > { %v5625_v11 = vpop.permute.xlu0 %2353  ;;  %v1642_v40 = vsel %vm4557_vm5, %v1637_v7, %v1641_v14  ;;  %v3859_v27 = vcombine.low %v4378_v46, %v4379_v42  ;;  %v2037_v24 = vsel %vm4499_vm2, %v2035_v48, %v2036_v25  ;;  %v615_v17 = vshrl.u32 %v255_v60, 16 }
  0xf7   : > { %2709 = vrot.lane.b32.xlu1 %v3981_v8, %s4422_s30  ;;  %v3973_v16 = vcombine.low %v1632_v1, %v1642_v40  ;;  %v3996_v26 = vcombine.low %v2034_v52, %v2037_v24  ;;  %v1978_v58 = vsel %vm4499_vm2, %v3844_v43, %v1977_v45  ;;  %v1979_v6 = vrot.slane %v1977_v45, 4  ;;  %v3829_v40 = vld [vmem:[%s4468_s19 + $0x54] sm:$0xe] }
  0xf8   : > { %v5637_v35 = vpop.permute.xlu1 %2447  ;;  %v618_v15 = vshll.u32 %v255_v60, 16  ;;  %v624_v32 = vshll.u32 %v5635_v29, 16  ;;  %v628_v23 = vshrl.u32 %v5635_v29, 16  ;;  %v5661_v54 = vsel %vm2795_vm6, %v3867_v34, %v5527_v63 }
  0xf9   : > { %2693 = vrot.lane.b32.xlu0 %v3973_v16, %s4422_s30  ;;  %v1981_v59 = vsel %vm4499_vm2, %v1979_v6, %v1980_v50  ;;  %v634_v49 = vshll.u32 %v5648_v4, 16  ;;  %v423_v36 = vshrl.u32 %v239_v41, 16  ;;  %v617_v47 = vrot.slane %v615_v17, 4 }
  0xfa   : > { %v5654_v12 = vpop.permute.xlu0 %2431  ;;  %v3988_v33 = vcombine.low %v1978_v58, %v1981_v59  ;;  %v620_v62 = vrot.slane %v618_v15, 5  ;;  %v626_v3 = vrot.slane %v624_v32, 5  ;;  %v5676_v63 = vsel %vm2795_vm6, %v3859_v27, %v5541_v10  ;;  %v5712_v59 = vld [vmem:[%s4468_s19 + $0xb4] sm:$0xf] }
  0xfb   : > { %2787 = vrot.lane.b32.xlu1 %v3996_v26, %s4423_s6  ;;  %v630_v13 = vrot.slane %v628_v23, 4  ;;  %v425_v20 = vrot.slane %v423_v36, 4  ;;  %v426_v1 = vshll.u32 %v239_v41, 16  ;;  %v432_v51 = vshll.u32 %v5667_v39, 16 }
  0xfc   : > { %v5672_v61 = vpop.permute.xlu1 %2449  ;;  %v621_v19 = vor.u32 %v620_v62, %v617_v47  ;;  %v436_v34 = vshrl.u32 %v5667_v39, 16  ;;  %v442_v25 = vshll.u32 %v5670_v57, 16  ;;  %v5689_v10 = vsel %vm2844_vm7, %v5609_v31, %v5546_v18 }
  0xfd   : > { %2771 = vrot.lane.b32.xlu0 %v3988_v33, %s4423_s6  ;;  %v631_v7 = vor.u32 %v630_v13, %v626_v3  ;;  %v636_v52 = vrot.slane %v634_v49, 5  ;;  %v428_v48 = vrot.slane %v426_v1, 5  ;;  %v5695_v8 = vsel %vm2844_vm7, %v2804_v38, %v5564_v22  ;;  %v5720_v33 = vld [vmem:[%s4468_s19 + $0xb8] sm:$0xf]  ;;  %v5732_v1 = vld [vmem:[%s4468_s19 + $0xbc] sm:$0x1] }
  0xfe   : > { %v5679_v14 = vpop.permute.xlu0 %2433  ;;  %v622_v43 = vrot.slane %v621_v19, 4  ;;  %v434_v45 = vrot.slane %v432_v51, 5  ;;  %v438_v50 = vrot.slane %v436_v34, 4  ;;  %v444_v27 = vrot.slane %v442_v25, 5 }
  0xff   : > { %v632_v46 = vrot.slane %v631_v7, 4  ;;  %v429_v42 = vor.u32 %v428_v48, %v425_v20  ;;  %v3853_v24 = vrot.slane %v3837_v28, 9  ;;  %v2040_v16 = vrot.slane %v5524_v55, 5  ;;  %v5741_v28 = vld [vmem:[%s4468_s19 + $0x58] sm:$0xf] }
 0x100   : > { %v5691_v60 = vpop.permute.xlu1 %2527  ;;  %v627_v31 = vsel %vm4557_vm5, %v622_v43, %v626_v3  ;;  %v439_v41 = vor.u32 %v438_v50, %v434_v45  ;;  %v2043_v22 = vrot.slane %v5578_v37, 5  ;;  %v3845_v58 = vrot.slane %v3829_v40, 9 }
 0x101   : > { %v637_v38 = vsel %vm4557_vm5, %v632_v46, %v636_v52  ;;  %v430_v26 = vrot.slane %v429_v42, 4  ;;  %v1984_v6 = vrot.slane %v5535_v2, 5  ;;  %v2041_v23 = vsel %vm4499_vm2, %v3853_v24, %v2040_v16  ;;  %v5751_v46 = vld [vmem:[%s4468_s19 + $0x5c] sm:$0x1] }
 0x102   : > { %v5698_v18 = vpop.permute.xlu0 %2511  ;;  %v3886_v15 = vcombine.low %v627_v31, %v637_v38  ;;  %v440_v32 = vrot.slane %v439_v41, 4  ;;  %v2042_v55 = vrot.slane %v2040_v16, 4  ;;  %v1987_v36 = vrot.slane %v5595_v44, 5  ;;  %v5735_v44 = vld [vmem:[%s4468_s19 + $0x54] sm:$0xf] }
 0x103   : > { %v435_v37 = vsel %vm4557_vm5, %v430_v26, %v434_v45  ;;  %v1985_v49 = vsel %vm4499_vm2, %v3845_v58, %v1984_v6  ;;  %v1986_v2 = vrot.slane %v1984_v6, 4  ;;  %v832_v62 = vrot.slane %v5648_v4, 5 }
 0x104   : > { %v5707_v17 = vpop.permute.xlu1 %2529  ;;  %2199 = vrot.lane.b32.xlu1 %v3886_v15, %s4418_s22  ;;  %v445_v3 = vsel %vm4557_vm5, %v440_v32, %v444_v27  ;;  %v776_v13 = vrot.slane %v5670_v57, 5  ;;  %v2044_v20 = vsel %vm4499_vm2, %v2042_v55, %v2043_v22  ;;  %v639_v25 = vshrl.u32 %v5712_v59, 16  ;;  %v676_v15 = vld [vmem:[%s4468_s19 + $0xa8] sm:$0xe] }
 0x105   : > { %v3878_v19 = vcombine.low %v435_v37, %v445_v3  ;;  %v3997_v51 = vcombine.low %v2041_v23, %v2044_v20  ;;  %v1988_v34 = vsel %vm4499_vm2, %v1986_v2, %v1987_v36  ;;  %v642_v48 = vshll.u32 %v5712_v59, 16  ;;  %v668_v2 = vld [vmem:[%s4468_s19 + $0x48] sm:$0xe] }
 0x106   : > { %v5722_v47 = vpop.permute.xlu0 %2513  ;;  %v3989_v52 = vcombine.low %v1985_v49, %v1988_v34  ;;  %v648_v43 = vshll.u32 %v5720_v33, 16  ;;  %v652_v45 = vshrl.u32 %v5720_v33, 16  ;;  %v641_v50 = vrot.slane %v639_v25, 4 }
 0x107   : > { %2183 = vrot.lane.b32.xlu0 %v3878_v19, %s4418_s22  ;;  %v658_v40 = vshll.u32 %v5732_v1, 16  ;;  %v447_v42 = vshrl.u32 %v5735_v44, 16  ;;  %v450_v27 = vshll.u32 %v5735_v44, 16  ;;  %v644_v31 = vrot.slane %v642_v48, 5 }
 0x108   : > { %v5743_v7 = vpop.permute.xlu1 %2623  ;;  %2789 = vrot.lane.b32.xlu1 %v3997_v51, %s4423_s6  ;;  %v650_v41 = vrot.slane %v648_v43, 5  ;;  %v654_v16 = vrot.slane %v652_v45, 4  ;;  %v456_v22 = vshll.u32 %v5741_v28, 16  ;;  %v460_v6 = vshrl.u32 %v5741_v28, 16 }
 0x109   : > { %v660_v38 = vrot.slane %v658_v40, 5  ;;  %v449_v26 = vrot.slane %v447_v42, 4  ;;  %v452_v58 = vrot.slane %v450_v27, 5  ;;  %v645_v23 = vor.u32 %v644_v31, %v641_v50  ;;  %v677_v42 = vld [vmem:[%s4468_s19 + $0xb4] sm:$0xe] }
 0x10a   : > { %v5755_v24 = vpop.permute.xlu0 %2607  ;;  %v655_v55 = vor.u32 %v654_v16, %v650_v41  ;;  %v458_v37 = vrot.slane %v456_v22, 5  ;;  %v466_v49 = vshll.u32 %v5751_v46, 16  ;;  %v2868_v36 = vsel %vm2844_vm7, %v5661_v54, %v5568_v56 }
 0x10b   : > { %v2852_v3 = vsel %vm2844_vm7, %v5676_v63, %v5586_v5  ;;  %2773 = vrot.lane.b32.xlu0 %v3989_v52, %s4423_s6  ;;  %v453_v20 = vor.u32 %v452_v58, %v449_v26  ;;  %v462_v19 = vrot.slane %v460_v6, 4  ;;  %v646_v51 = vrot.slane %v645_v23, 4 }
 0x10c   : > { %v5761_v32 = vpop.permute.xlu1 %2625  ;;  %v656_v34 = vrot.slane %v655_v55, 4  ;;  %v468_v25 = vrot.slane %v466_v49, 5  ;;  %v3694_v48 = vrot.slane %v676_v15, 9  ;;  %v829_v56 = vrot.slane %v5635_v29, 5 }
 0x10d   : > { %v454_v45 = vrot.slane %v453_v20, 4  ;;  %v463_v50 = vor.u32 %v462_v19, %v458_v37  ;;  %v3686_v54 = vrot.slane %v668_v2, 9  ;;  %v2899_v5 = vsel %vm2877_vm8, %v5689_v10, %v5591_v0  ;;  %v669_v0 = vld [vmem:[%s4468_s19 + $0x54] sm:$0xe] }
 0x10e   : > { %v5772_v43 = vpop.permute.xlu0 %2609  ;;  %v651_v63 = vsel %vm4557_vm5, %v646_v51, %v650_v41  ;;  %v661_v52 = vsel %vm4557_vm5, %v656_v34, %v660_v38  ;;  %v773_v40 = vrot.slane %v5667_v39, 5  ;;  %v2883_v27 = vsel %vm2877_vm8, %v5695_v8, %v5603_v9  ;;  %v3708_v51 = vld [vmem:[%s4468_s19 + $0x54] sm:$0xf]  ;;  %v5828_v34 = vld [vmem:[%s4468_s19 + $0xb8] sm:$0xf] }
 0x10f   : > { %v3887_v31 = vcombine.low %v651_v63, %v661_v52  ;;  %v459_v29 = vsel %vm4557_vm5, %v454_v45, %v458_v37  ;;  %v464_v16 = vrot.slane %v463_v50, 4  ;;  %v830_v41 = vsel %vm4499_vm2, %v3694_v48, %v829_v56  ;;  %v3724_v37 = vld [vmem:[%s4468_s19 + $0xb4] sm:$0xf]  ;;  %v3726_v52 = vld [vmem:[%s4468_s19 + $0xc0] sm:$0xf] }
 0x110   : > { %v831_v22 = vrot.slane %v829_v56, 4  ;;  %v774_v39 = vsel %vm4499_vm2, %v3686_v54, %v773_v40  ;;  %v775_v38 = vrot.slane %v773_v40, 4  ;;  %v3695_v8 = vrot.slane %v677_v42, 9  ;;  %v5837_v56 = vld [vmem:[%s4468_s19 + $0x58] sm:$0xf] }
 0x111   : > { %v5790_v10 = vpop.permute.xlu1 %2703  ;;  %2201 = vrot.lane.b32.xlu1 %v3887_v31, %s4418_s22  ;;  %v469_v9 = vsel %vm4557_vm5, %v464_v16, %v468_v25  ;;  %v836_v26 = vrot.slane %v5720_v33, 5  ;;  %v839_v58 = vrot.slane %v5732_v1, 5  ;;  %v3687_v55 = vrot.slane %v669_v0, 9 }
 0x112   : > { %v3879_v6 = vcombine.low %v459_v29, %v469_v9  ;;  %v833_v15 = vsel %vm4499_vm2, %v831_v22, %v832_v62  ;;  %v777_v23 = vsel %vm4499_vm2, %v775_v38, %v776_v13  ;;  %v5810_v49 = vpop.permute.xlu0 %2687  ;;  %v2901_v1 = vsel %vm2877_vm8, %v2868_v36, %v5605_v53 }
 0x113   : > { %v3902_v2 = vcombine.low %v830_v41, %v833_v15  ;;  %v837_v4 = vsel %vm4499_vm2, %v3695_v8, %v836_v26  ;;  %v838_v20 = vrot.slane %v836_v26, 4  ;;  %v2885_v57 = vsel %vm2877_vm8, %v2852_v3, %v5625_v11  ;;  %v5860_v41 = vld [vmem:[%s4468_s19 + $0xc4] sm:$0xf]  ;;  %v5871_v15 = vld [vmem:[%s4468_s19 + $0xbc] sm:$0x1] }
 0x114   : > { %2185 = vrot.lane.b32.xlu0 %v3879_v6, %s4418_s22  ;;  %v3894_v62 = vcombine.low %v774_v39, %v777_v23  ;;  %v780_v13 = vrot.slane %v5741_v28, 5  ;;  %v783_v19 = vrot.slane %v5751_v46, 5  ;;  %v2932_v53 = vsel %vm2910_vm9, %v2899_v5, %v5637_v35 }
 0x115   : > { %2279 = vrot.lane.b32.xlu1 %v3902_v2, %s4417_s21  ;;  %v840_v36 = vsel %vm4499_vm2, %v838_v20, %v839_v58  ;;  %v1227_v25 = vshrl.u32 %v3724_v37, 16  ;;  %v1230_v11 = vshll.u32 %v3724_v37, 16  ;;  %v5830_v3 = vpop.permute.xlu1 %2705  ;;  %v2916_v46 = vsel %vm2910_vm9, %v2883_v27, %v5654_v12 }
 0x116   : > { %v3903_v48 = vcombine.low %v837_v4, %v840_v36  ;;  %v781_v45 = vsel %vm4499_vm2, %v3687_v55, %v780_v13  ;;  %v782_v50 = vrot.slane %v780_v13, 4  ;;  %v5841_v35 = vsel %vm2910_vm9, %v2901_v1, %v5672_v61  ;;  %v3710_v61 = vld [vmem:[%s4468_s19 + $0x60] sm:$0xf] }
 0x117   : > { %v5845_v54 = vsel %vm2910_vm9, %v2885_v57, %v5679_v14  ;;  %v1035_v5 = vshrl.u32 %v3708_v51, 16  ;;  %v1038_v63 = vshll.u32 %v3708_v51, 16  ;;  %v1229_v40 = vrot.slane %v1227_v25, 4  ;;  %v5854_v31 = vpop.permute.xlu0 %2689 }
 0x118   : > { %2263 = vrot.lane.b32.xlu0 %v3894_v62, %s4417_s21  ;;  %v784_v12 = vsel %vm4499_vm2, %v782_v50, %v783_v19  ;;  %v1240_v42 = vshrl.u32 %v5828_v34, 16  ;;  %v3918_v27 = vcombine.low %v3724_v37, %v5828_v34  ;;  %v1232_v29 = vrot.slane %v1230_v11, 5 }
 0x119   : > { %2281 = vrot.lane.b32.xlu1 %v3903_v48, %s4417_s21  ;;  %v3895_v14 = vcombine.low %v781_v45, %v784_v12  ;;  %v1048_v16 = vshrl.u32 %v5837_v56, 16  ;;  %v3910_v0 = vcombine.low %v3708_v51, %v5837_v56  ;;  %v1037_v22 = vrot.slane %v1035_v5, 4  ;;  %v5873_v23 = vpop.permute.xlu1 %2783 }
 0x11a   : > { %v1040_v39 = vrot.slane %v1038_v63, 5  ;;  %v1251_v38 = vshrl.u32 %v3726_v52, 16  ;;  %v1254_v9 = vshll.u32 %v3726_v52, 16  ;;  %v5864_v8 = vsel %vm2943_vm10, %v2932_v53, %v5691_v60  ;;  %v5879_v60 = vld [vmem:[%s4468_s19 + $0x5c] sm:$0x1] }
 0x11b   : > { %v5868_v26 = vsel %vm2943_vm10, %v2916_v46, %v5698_v18  ;;  %v1059_v58 = vshrl.u32 %v3710_v61, 16  ;;  %v1062_v6 = vshll.u32 %v3710_v61, 16  ;;  %v1264_v1 = vshrl.u32 %v5860_v41, 16  ;;  %v5883_v18 = vld [vmem:[%s4468_s19 + $0x64] sm:$0xf]  ;;  %v5888_v36 = vpop.permute.xlu0 %2767 }
 0x11c   : > { %2265 = vrot.lane.b32.xlu0 %v3895_v14, %s4417_s21  ;;  %v1253_v55 = vrot.slane %v1251_v38, 4  ;;  %v1256_v37 = vrot.slane %v1254_v9, 5  ;;  %v3919_v2 = vcombine.low %v3726_v52, %v5860_v41  ;;  %v1233_v57 = vor.u32 %v1232_v29, %v1229_v40  ;;  %v5895_v52 = vld [vmem:[%s4468_s19 + $0xc8] sm:$0x1]  ;;  %s4043_s21 = sshll.u32 %s6328_s12, 7 }
 0x11d   : > { %2375 = vrot.lane.b32.xlu1 %v3918_v27, %s4416_s20  ;;  %v1061_v4 = vrot.slane %v1059_v58, 4  ;;  %v1064_v20 = vrot.slane %v1062_v6, 5  ;;  %v1236_v62 = vshll.u32 %v5828_v34, 16  ;;  %v1242_v13 = vrot.slane %v1240_v42, 4 }
 0x11e   : > { %v1246_v19 = vshll.u32 %v5871_v15, 16  ;;  %v1041_v51 = vor.u32 %v1040_v39, %v1037_v22  ;;  %v1044_v53 = vshll.u32 %v5837_v56, 16  ;;  %v1234_v25 = vrot.slane %v1233_v57, 4  ;;  %v5908_v57 = vld [vmem:[%s4468_s19 + $0x68] sm:$0x1] }
 0x11f   : > { %v1238_v11 = vrot.slane %v1236_v62, 5  ;;  %v1050_v46 = vrot.slane %v1048_v16, 4  ;;  %v1054_v48 = vshll.u32 %v5879_v60, 16  ;;  %v1072_v45 = vshrl.u32 %v5883_v18, 16 }
 0x120   : > { %2359 = vrot.lane.b32.xlu0 %v3910_v0, %s4416_s20  ;;  %v3911_v50 = vcombine.low %v3710_v61, %v5883_v18  ;;  %v1042_v5 = vrot.slane %v1041_v51, 4  ;;  %v1046_v63 = vrot.slane %v1044_v53, 5  ;;  %v1248_v42 = vrot.slane %v1246_v19, 5 }
 0x121   : > { %2377 = vrot.lane.b32.xlu1 %v3919_v2, %s4416_s20  ;;  %v1239_v12 = vsel %vm4557_vm5, %v1234_v25, %v1238_v11  ;;  %v1243_v40 = vor.u32 %v1242_v13, %v1238_v11  ;;  %v1056_v27 = vrot.slane %v1054_v48, 5  ;;  %v5900_v14 = vpop.permute.xlu1 %2195  ;;  %v1257_v61 = vor.u32 %v1256_v37, %v1253_v55 }
 0x122   : > { %v1047_v29 = vsel %vm4557_vm5, %v1042_v5, %v1046_v63  ;;  %v1051_v16 = vor.u32 %v1050_v46, %v1046_v63  ;;  %v1260_v0 = vshll.u32 %v5860_v41, 16  ;;  %v1266_v39 = vrot.slane %v1264_v1, 4 }
 0x123   : > { %v1244_v22 = vrot.slane %v1243_v40, 4  ;;  %v1270_v38 = vshll.u32 %v5895_v52, 16  ;;  %v1065_v9 = vor.u32 %v1064_v20, %v1061_v4  ;;  %v1258_v6 = vrot.slane %v1257_v61, 4  ;;  %v3758_v20 = vld [vmem:[%s4468_s19 + $0xb4] sm:$0xe] }
 0x124   : > { %2361 = vrot.lane.b32.xlu0 %v3911_v50, %s4416_s20  ;;  %v1052_v58 = vrot.slane %v1051_v16, 4  ;;  %v1262_v2 = vrot.slane %v1260_v0, 5  ;;  %v1068_v62 = vshll.u32 %v5883_v18, 16  ;;  %v5911_v13 = vpop.permute.xlu0 %2179  ;;  %v2967_v55 = vsel %vm2943_vm10, %v5841_v35, %v5707_v17  ;;  %v3750_v35 = vld [vmem:[%s4468_s19 + $0x54] sm:$0xe] }
 0x125   : > { %v1249_v37 = vsel %vm4557_vm5, %v1244_v22, %v1248_v42  ;;  %v1066_v1 = vrot.slane %v1065_v9, 4  ;;  %v1074_v4 = vrot.slane %v1072_v45, 4  ;;  %v1272_v25 = vrot.slane %v1270_v38, 5  ;;  %v5926_v50 = vpop.permute.xlu1 %2785 }
 0x126   : > { %v3934_v19 = vcombine.low %v1239_v12, %v1249_v37  ;;  %v1057_v51 = vsel %vm4557_vm5, %v1052_v58, %v1056_v27  ;;  %v1267_v53 = vor.u32 %v1266_v39, %v1262_v2  ;;  %v2951_v11 = vsel %vm2943_vm10, %v5845_v54, %v5722_v47  ;;  %v3759_v27 = vld [vmem:[%s4468_s19 + $0xc0] sm:$0xe] }
 0x127   : > { %v3926_v46 = vcombine.low %v1047_v29, %v1057_v51  ;;  %v1070_v48 = vrot.slane %v1068_v62, 5  ;;  %v1078_v17 = vshll.u32 %v5908_v57, 16  ;;  %v1263_v45 = vsel %vm4557_vm5, %v1258_v6, %v1262_v2  ;;  %v3751_v58 = vld [vmem:[%s4468_s19 + $0x60] sm:$0xe] }
 0x128   : > { %2455 = vrot.lane.b32.xlu1 %v3934_v19, %s4419_s23  ;;  %v1268_v5 = vrot.slane %v1267_v53, 4  ;;  %v3774_v63 = vrot.slane %v3758_v20, 9  ;;  %v1438_v12 = vrot.slane %v5828_v34, 5  ;;  %v1441_v42 = vrot.slane %v5871_v15, 5  ;;  %v5941_v34 = vpop.permute.xlu0 %2769  ;;  %v3804_v20 = vld [vmem:[%s4468_s19 + $0xc0] sm:$0xf] }
 0x129   : > { %2439 = vrot.lane.b32.xlu0 %v3926_v46, %s4419_s23  ;;  %v1071_v47 = vsel %vm4557_vm5, %v1066_v1, %v1070_v48  ;;  %v1075_v54 = vor.u32 %v1074_v4, %v1070_v48  ;;  %v1080_v40 = vrot.slane %v1078_v17, 5  ;;  %v3766_v0 = vrot.slane %v3750_v35, 9  ;;  %v5971_v46 = vld [vmem:[%s4468_s19 + $0x60] sm:$0xf]  ;;  %v5984_v17 = vld [vmem:[%s4468_s19 + $0xc4] sm:$0xf] }
 0x12a   : > { %v1273_v29 = vsel %vm4557_vm5, %v1268_v5, %v1272_v25  ;;  %v1439_v16 = vsel %vm4499_vm2, %v3774_v63, %v1438_v12  ;;  %v1440_v61 = vrot.slane %v1438_v12, 4  ;;  %v1382_v38 = vrot.slane %v5837_v56, 5 }
 0x12b   : > { %v3935_v22 = vcombine.low %v1263_v45, %v1273_v29  ;;  %v1076_v39 = vrot.slane %v1075_v54, 4  ;;  %v1385_v9 = vrot.slane %v5879_v60, 5  ;;  %v2998_v15 = vsel %vm2976_vm11, %v5864_v8, %v5743_v7 }
 0x12c   : > { %v2982_v6 = vsel %vm2976_vm11, %v5868_v26, %v5755_v24  ;;  %v1442_v2 = vsel %vm4499_vm2, %v1440_v61, %v1441_v42  ;;  %v3775_v62 = vrot.slane %v3759_v27, 9  ;;  %v1383_v37 = vsel %vm4499_vm2, %v3766_v0, %v1382_v38  ;;  %v6011_v0 = vld [vmem:[%s4468_s19 + $0x6c] sm:$0xf] }
 0x12d   : > { %2457 = vrot.lane.b32.xlu1 %v3935_v22, %s4419_s23  ;;  %v1081_v56 = vsel %vm4557_vm5, %v1076_v39, %v1080_v40  ;;  %v3950_v60 = vcombine.low %v1439_v16, %v1442_v2  ;;  %v1384_v1 = vrot.slane %v1382_v38, 4  ;;  %v1445_v24 = vrot.slane %v5860_v41, 5  ;;  %v6021_v38 = vld [vmem:[%s4468_s19 + $0xd0] sm:$0xf] }
 0x12e   : > { %v3927_v8 = vcombine.low %v1071_v47, %v1081_v56  ;;  %v1448_v26 = vrot.slane %v5895_v52, 5  ;;  %v3767_v4 = vrot.slane %v3751_v58, 9  ;;  %v3000_v19 = vsel %vm2976_vm11, %v2967_v55, %v5761_v32  ;;  %v3806_v47 = vld [vmem:[%s4468_s19 + $0xcc] sm:$0xf]  ;;  %v6024_v58 = vld [vmem:[%s4468_s19 + $0x70] sm:$0xf] }
 0x12f   : > { %v5959_v7 = vpop.permute.xlu1 %2197  ;;  %v1386_v51 = vsel %vm4499_vm2, %v1384_v1, %v1385_v9  ;;  %v1389_v53 = vrot.slane %v5883_v18, 5  ;;  %v1392_v25 = vrot.slane %v5908_v57, 5  ;;  %v2984_v41 = vsel %vm2976_vm11, %v2951_v11, %v5772_v43 }
 0x130   : > { %2441 = vrot.lane.b32.xlu0 %v3927_v8, %s4419_s23  ;;  %v3942_v52 = vcombine.low %v1383_v37, %v1386_v51  ;;  %v1446_v48 = vsel %vm4499_vm2, %v3775_v62, %v1445_v24  ;;  %v1447_v32 = vrot.slane %v1445_v24, 4  ;;  %v1836_v35 = vshrl.u32 %v3804_v20, 16  ;;  %v6035_v37 = vld [vmem:[%s4468_s19 + $0xc8] sm:$0x1]  ;;  %s6261_s23 = scalar_lea.vmem %s6318_s3, %s4043_s21 }
 0x131   : > { %2535 = vrot.lane.b32.xlu1 %v3950_v60, %s4420_s24  ;;  %v1390_v18 = vsel %vm4499_vm2, %v3767_v4, %v1389_v53  ;;  %v1391_v57 = vrot.slane %v1389_v53, 4  ;;  %v1839_v45 = vshll.u32 %v3804_v20, 16  ;;  %v3031_v11 = vsel %vm3009_vm12, %v2998_v15, %v5790_v10 }
 0x132   : > { %v5978_v55 = vpop.permute.xlu0 %2181  ;;  %v3015_v5 = vsel %vm3009_vm12, %v2982_v6, %v5810_v49  ;;  %v1449_v63 = vsel %vm4499_vm2, %v1447_v32, %v1448_v26  ;;  %v1644_v12 = vshrl.u32 %v5971_v46, 16  ;;  %v3033_v42 = vsel %vm3009_vm12, %v3000_v19, %v5830_v3  ;;  %v6005_v49 = vld [vmem:[%s4468_s19 + $0x64] sm:$0xf] }
 0x133   : > { %v5986_v43 = vpop.permute.xlu1 %2275  ;;  %v3951_v54 = vcombine.low %v1446_v48, %v1449_v63  ;;  %v1393_v40 = vsel %vm4499_vm2, %v1391_v57, %v1392_v25  ;;  %v6002_v10 = vsel %vm3009_vm12, %v2984_v41, %v5854_v31  ;;  %v1838_v29 = vrot.slane %v1836_v35, 4 }
 0x134   : > { %2519 = vrot.lane.b32.xlu0 %v3942_v52, %s4420_s24  ;;  %v3943_v27 = vcombine.low %v1390_v18, %v1393_v40  ;;  %v3966_v16 = vcombine.low %v3804_v20, %v5984_v17  ;;  %v1647_v61 = vshll.u32 %v5971_v46, 16  ;;  %v1841_v3 = vrot.slane %v1839_v45, 5 }
 0x135   : > { %2537 = vrot.lane.b32.xlu1 %v3951_v54, %s4420_s24  ;;  %v3064_v31 = vsel %vm3042_vm13, %v3031_v11, %v5873_v23  ;;  %v3048_v39 = vsel %vm3042_vm13, %v3015_v5, %v5888_v36  ;;  %v1860_v9 = vshrl.u32 %v3806_v47, 16  ;;  %v1849_v15 = vshrl.u32 %v5984_v17, 16 }
 0x136   : > { %v6013_v22 = vpop.permute.xlu0 %2259  ;;  %v1646_v6 = vrot.slane %v1644_v12, 4  ;;  %v1657_v2 = vshrl.u32 %v6005_v49, 16  ;;  %v1863_v62 = vshll.u32 %v3806_v47, 16  ;;  %4247 = vmatprep.mubr.msk.bf16.mxu1 %vm3075_vm14, %v3064_v31  ;;  %4231 = vmatprep.mubr.msk.bf16.mxu0 %vm3075_vm14, %v3048_v39  ;;  %v1649_v56 = vrot.slane %v1647_v61, 5  ;;  %v6066_v61 = vld [vmem:[%s4468_s19 + $0xd4] sm:$0x1] }
 0x137   : > { %v3958_v23 = vcombine.low %v5971_v46, %v6005_v49  ;;  %v1668_v36 = vshrl.u32 %v6011_v0, 16  ;;  %v1671_v60 = vshll.u32 %v6011_v0, 16  ;;  %v1862_v8 = vrot.slane %v1860_v9, 4  ;;  %v6050_v46 = vld [vmem:[%s4468_s19 + $0x68] sm:$0x1] }
 0x138   : > { %v6037_v1 = vpop.permute.xlu1 %2277  ;;  %2521 = vrot.lane.b32.xlu0 %v3943_v27, %s4420_s24  ;;  %v1873_v24 = vshrl.u32 %v6021_v38, 16  ;;  %v3967_v26 = vcombine.low %v3806_v47, %v6021_v38  ;;  %v1681_v4 = vshrl.u32 %v6024_v58, 16  ;;  %v1865_v19 = vrot.slane %v1863_v62, 5 }
 0x139   : > { %2631 = vrot.lane.b32.xlu1 %v3966_v16, %s4421_s25  ;;  %v3959_v51 = vcombine.low %v6011_v0, %v6024_v58  ;;  %v1842_v53 = vor.u32 %v1841_v3, %v1838_v29  ;;  %v1845_v25 = vshll.u32 %v5984_v17, 16  ;;  %v1670_v41 = vrot.slane %v1668_v36, 4 }
 0x13a   : > { %v6043_v20 = vpop.permute.xlu0 %2261  ;;  %v1673_v52 = vrot.slane %v1671_v60, 5  ;;  %v1851_v48 = vrot.slane %v1849_v15, 4  ;;  %v1855_v32 = vshll.u32 %v6035_v37, 16  ;;  %v1650_v35 = vor.u32 %v1649_v56, %v1646_v6  ;;  %v6079_v56 = vld [vmem:[%s4468_s19 + $0x74] sm:$0x1] }
 0x13b   : > { %v1843_v18 = vrot.slane %v1842_v53, 4  ;;  %v1847_v57 = vrot.slane %v1845_v25, 5  ;;  %v1653_v45 = vshll.u32 %v6005_v49, 16  ;;  %v1659_v63 = vrot.slane %v1657_v2, 4  ;;  %v3838_v53 = vld [vmem:[%s4468_s19 + $0xc0] sm:$0xe] }
 0x13c   : > { %v6054_v11 = vpop.permute.xlu1 %2371  ;;  %2615 = vrot.lane.b32.xlu0 %v3958_v23, %s4421_s25  ;;  %v1857_v5 = vrot.slane %v1855_v32, 5  ;;  %v1663_v12 = vshll.u32 %v6050_v46, 16  ;;  %v3066_v47 = vsel %vm3042_vm13, %v3033_v42, %v5926_v50  ;;  %v1651_v29 = vrot.slane %v1650_v35, 4 }
 0x13d   : > { %2633 = vrot.lane.b32.xlu1 %v3967_v26, %s4421_s25  ;;  %v1848_v40 = vsel %vm4557_vm5, %v1843_v18, %v1847_v57  ;;  %v1852_v27 = vor.u32 %v1851_v48, %v1847_v57  ;;  %v1655_v16 = vrot.slane %v1653_v45, 5  ;;  %4248 = vmatmul.mubr.msk.bf16.gmra.mrb[4].mxu1 %vm3075_vm14, %v3066_v47  ;;  %v3050_v50 = vsel %vm3042_vm13, %v6002_v10, %v5941_v34  ;;  %v3830_v57 = vld [vmem:[%s4468_s19 + $0x60] sm:$0xe] }
 0x13e   : > { %v6060_v54 = vpop.permute.xlu0 %2355  ;;  %v1665_v0 = vrot.slane %v1663_v12, 5  ;;  %v1866_v42 = vor.u32 %v1865_v19, %v1862_v8  ;;  %v1869_v3 = vshll.u32 %v6021_v38, 16  ;;  %v1875_v15 = vrot.slane %v1873_v24, 4  ;;  %4232 = vmatmul.mubr.msk.bf16.gmra.mrb[4].mxu0 %vm3075_vm14, %v3050_v50 }
 0x13f   : > { %v1853_v31 = vrot.slane %v1852_v27, 4  ;;  %v1656_v39 = vsel %vm4557_vm5, %v1651_v29, %v1655_v16  ;;  %v1660_v9 = vor.u32 %v1659_v63, %v1655_v16  ;;  %v1879_v62 = vshll.u32 %v6066_v61, 16 }
 0x140   : > { %2617 = vrot.lane.b32.xlu0 %v3959_v51, %s4421_s25  ;;  %v1867_v6 = vrot.slane %v1866_v42, 4  ;;  %v1871_v2 = vrot.slane %v1869_v3, 5  ;;  %v1674_v34 = vor.u32 %v1673_v52, %v1670_v41  ;;  %v6081_v10 = vpop.permute.xlu1 %2373  ;;  %v1677_v60 = vshll.u32 %v6024_v58, 16 }
 0x141   : > { %v1858_v23 = vsel %vm4557_vm5, %v1853_v31, %v1857_v5  ;;  %v1661_v36 = vrot.slane %v1660_v9, 4  ;;  %v1683_v8 = vrot.slane %v1681_v4, 4  ;;  %v1881_v51 = vrot.slane %v1879_v62, 5 }
 0x142   : > { %v6086_v24 = vpop.permute.xlu0 %2357  ;;  %v3982_v26 = vcombine.low %v1848_v40, %v1858_v23  ;;  %v1876_v19 = vor.u32 %v1875_v15, %v1871_v2  ;;  %v1675_v41 = vrot.slane %v1674_v34, 4  ;;  %v1679_v52 = vrot.slane %v1677_v60, 5  ;;  %v3839_v40 = vld [vmem:[%s4468_s19 + $0xcc] sm:$0xe] }
 0x143   : > { %v1666_v25 = vsel %vm4557_vm5, %v1661_v36, %v1665_v0  ;;  %v1687_v48 = vshll.u32 %v6079_v56, 16  ;;  %v1872_v4 = vsel %vm4557_vm5, %v1867_v6, %v1871_v2  ;;  %v3854_v5 = vrot.slane %v3838_v53, 9  ;;  %v3831_v15 = vld [vmem:[%s4468_s19 + $0x6c] sm:$0xe] }
 0x144   : > { %2711 = vrot.lane.b32.xlu1 %v3982_v26, %s4422_s30  ;;  %v3974_v32 = vcombine.low %v1656_v39, %v1666_v25  ;;  %v1877_v18 = vrot.slane %v1876_v19, 4  ;;  %v1684_v35 = vor.u32 %v1683_v8, %v1679_v52  ;;  %v1680_v12 = vsel %vm4557_vm5, %v1675_v41, %v1679_v52 }
 0x145   : > { %v1689_v45 = vrot.slane %v1687_v48, 5  ;;  %v2047_v47 = vrot.slane %v5984_v17, 5  ;;  %v2050_v0 = vrot.slane %v6035_v37, 5  ;;  %v3846_v50 = vrot.slane %v3830_v57, 9 }
 0x146   : > { %2695 = vrot.lane.b32.xlu0 %v3974_v32, %s4422_s30  ;;  %v1882_v63 = vsel %vm4557_vm5, %v1877_v18, %v1881_v51  ;;  %v1685_v16 = vrot.slane %v1684_v35, 4  ;;  %v1991_v39 = vrot.slane %v6005_v49, 5  ;;  %v1994_v9 = vrot.slane %v6050_v46, 5 }
 0x147   : > { %v6103_v27 = vpop.permute.xlu1 %2451  ;;  %v3983_v29 = vcombine.low %v1872_v4, %v1882_v63  ;;  %v2048_v3 = vsel %vm4499_vm2, %v3854_v5, %v2047_v47  ;;  %v2049_v31 = vrot.slane %v2047_v47, 4  ;;  %v3855_v6 = vrot.slane %v3839_v40, 9  ;;  %v4380_v63 = vld [vmem:[%s4468_s19 + $0x90] sm:$0xf] }
 0x148   : > { %v6106_v42 = vpop.permute.xlu0 %2435  ;;  %v1690_v17 = vsel %vm4557_vm5, %v1685_v16, %v1689_v45  ;;  %v1992_v62 = vsel %vm4499_vm2, %v3846_v50, %v1991_v39  ;;  %v1993_v34 = vrot.slane %v1991_v39, 4  ;;  %v2054_v49 = vrot.slane %v6021_v38, 5  ;;  %v4382_v40 = vld [vmem:[%s4468_s19 + $0x30] sm:$0xf] }
 0x149   : > { %2713 = vrot.lane.b32.xlu1 %v3983_v29, %s4422_s30  ;;  %v3975_v2 = vcombine.low %v1680_v12, %v1690_v17  ;;  %v2051_v37 = vsel %vm4499_vm2, %v2049_v31, %v2050_v0  ;;  %v2057_v46 = vrot.slane %v6066_v61, 5  ;;  %v3847_v36 = vrot.slane %v3831_v15, 9  ;;  %v4381_v12 = vld [vmem:[%s4468_s19 + $0x94] sm:$0xf] }
 0x14a   : > { %v3998_v23 = vcombine.low %v2048_v3, %v2051_v37  ;;  %v1995_v30 = vsel %vm4499_vm2, %v1993_v34, %v1994_v9  ;;  %v1998_v60 = vrot.slane %v6024_v58, 5  ;;  %v2001_v8 = vrot.slane %v6079_v56, 5  ;;  %v4383_v29 = vld [vmem:[%s4468_s19 + $0x34] sm:$0xf] }
 0x14b   : > { %2697 = vrot.lane.b32.xlu0 %v3975_v2, %s4422_s30  ;;  %v3990_v19 = vcombine.low %v1992_v62, %v1995_v30  ;;  %v2055_v38 = vsel %vm4499_vm2, %v3855_v6, %v2054_v49  ;;  %v2056_v51 = vrot.slane %v2054_v49, 4  ;;  %v3868_v47 = vcombine.low %v4380_v63, %v4381_v12  ;;  %v4385_v49 = vld [vmem:[%s4468_s19 + $0xa0] sm:$0xf] }
 0x14c   : > { %v1999_v53 = vsel %vm4499_vm2, %v3847_v36, %v1998_v60  ;;  %v2000_v25 = vrot.slane %v1998_v60, 4  ;;  %v3860_v16 = vcombine.low %v4382_v40, %v4383_v29  ;;  %v4386_v36 = vld [vmem:[%s4468_s19 + $0x3c] sm:$0xf]  ;;  %v4387_v30 = vld [vmem:[%s4468_s19 + $0x40] sm:$0xf] }
 0x14d   : > { %v6127_v26 = vpop.permute.xlu1 %2453  ;;  %2791 = vrot.lane.b32.xlu1 %v3998_v23, %s4423_s6  ;;  %v2058_v58 = vsel %vm4499_vm2, %v2056_v51, %v2057_v46  ;;  %v2834_v50 = vsel %vm2795_vm6, %v3868_v47, %v5900_v14  ;;  %v4384_v23 = vld [vmem:[%s4468_s19 + $0x9c] sm:$0xf]  ;;  %v3861_v60 = vcombine.low %v4386_v36, %v4387_v30 }
 0x14e   : > { %v6132_v61 = vpop.permute.xlu0 %2437  ;;  %v3999_v56 = vcombine.low %v2055_v38, %v2058_v58  ;;  %v2002_v41 = vsel %vm4499_vm2, %v2000_v25, %v2001_v8  ;;  %v2870_v3 = vsel %vm2844_vm7, %v2834_v50, %v5986_v43  ;;  %v2810_v31 = vsel %vm2795_vm6, %v3860_v16, %v5911_v13 }
 0x14f   : > { %2775 = vrot.lane.b32.xlu0 %v3990_v19, %s4423_s6  ;;  %v3991_v48 = vcombine.low %v1999_v53, %v2002_v41  ;;  %v2903_v39 = vsel %vm2877_vm8, %v2870_v3, %v6054_v11  ;;  %v2854_v15 = vsel %vm2844_vm7, %v2810_v31, %v6013_v22  ;;  %v2813_v53 = vsel %vm2795_vm6, %v3861_v60, %v5978_v55 }
 0x150   : > { %v2936_v17 = vsel %vm2910_vm9, %v2903_v39, %v6103_v27  ;;  %v2887_v14 = vsel %vm2877_vm8, %v2854_v15, %v6060_v54  ;;  %v2856_v58 = vsel %vm2844_vm7, %v2813_v53, %v6043_v20 }
 0x151   : > { %v2532_v52 = vpop.permute.xlu1 %2531  ;;  %2793 = vrot.lane.b32.xlu1 %v3999_v56, %s4423_s6  ;;  %v2920_v13 = vsel %vm2910_vm9, %v2887_v14, %v6106_v42  ;;  %v3869_v42 = vcombine.low %v4384_v23, %v4385_v49 }
 0x152   : > { %v2516_v32 = vpop.permute.xlu0 %2515  ;;  %v2969_v43 = vsel %vm2943_vm10, %v2936_v17, %v2532_v52 }
 0x153   : > { %2777 = vrot.lane.b32.xlu0 %v3991_v48, %s4423_s6  ;;  %v2953_v2 = vsel %vm2943_vm10, %v2920_v13, %v2516_v32  ;;  %v2837_v8 = vsel %vm2795_vm6, %v3869_v42, %v5959_v7  ;;  %v2889_v7 = vsel %vm2877_vm8, %v2856_v58, %v6086_v24 }
 0x154   : > { %v2872_v19 = vsel %vm2844_vm7, %v2837_v8, %v6037_v1 }
 0x155   : > { %v2534_v4 = vpop.permute.xlu1 %2533  ;;  %v2905_v38 = vsel %vm2877_vm8, %v2872_v19, %v6081_v10  ;;  %v2922_v10 = vsel %vm2910_vm9, %v2889_v7, %v6132_v61  ;;  %v6226_v19 = vld [vmem:[%s6317_s2] ss:$0 sm:$0xff] }
 0x156   : > { %v2518_v18 = vpop.permute.xlu0 %2517  ;;  %v2938_v25 = vsel %vm2910_vm9, %v2905_v38, %v6127_v26 }
 0x157   : > { %v2971_v56 = vsel %vm2943_vm10, %v2938_v25, %v2534_v4  ;;  %v2955_v48 = vsel %vm2943_vm10, %v2922_v10, %v2518_v18 }
 0x159   : > { %v2628_v57 = vpop.permute.xlu1 %2627 }
 0x15a   : > { %v2612_v35 = vpop.permute.xlu0 %2611  ;;  %v3002_v11 = vsel %vm2976_vm11, %v2969_v43, %v2628_v57  ;;  %v4388_v43 = vld [vmem:[%s4468_s19 + $0xa8] sm:$0xf] }
 0x15b   : > { %v2986_v27 = vsel %vm2976_vm11, %v2953_v2, %v2612_v35  ;;  %v4390_v2 = vld [vmem:[%s4468_s19 + $0x48] sm:$0xf] }
 0x15d   : > { %v2630_v45 = vpop.permute.xlu1 %2629 }
 0x15e   : > { %v2614_v5 = vpop.permute.xlu0 %2613  ;;  %v3004_v1 = vsel %vm2976_vm11, %v2971_v56, %v2630_v45 }
 0x15f   : > { %v2988_v20 = vsel %vm2976_vm11, %v2955_v48, %v2614_v5 }
 0x163   : > { %v2708_v21 = vpop.permute.xlu1 %2707 }
 0x164   : > { %v2692_v0 = vpop.permute.xlu0 %2691  ;;  %v3035_v22 = vsel %vm3009_vm12, %v3002_v11, %v2708_v21 }
 0x165   : > { %v3019_v54 = vsel %vm3009_vm12, %v2986_v27, %v2692_v0  ;;  %v3871_v27 = vcombine.low %v5712_v59, %v5720_v33 }
 0x169   : > { %v2710_v9 = vpop.permute.xlu1 %2709 }
 0x16a   : > { %v3037_v52 = vsel %vm3009_vm12, %v3004_v1, %v2710_v9 }
 0x16b   : > { %v2694_v6 = vpop.permute.xlu0 %2693 }
 0x16c   : > { %v3021_v32 = vsel %vm3009_vm12, %v2988_v20, %v2694_v6  ;;  %v4389_v6 = vld [vmem:[%s4468_s19 + $0xac] sm:$0xf] }
 0x16d   : > { %v2788_v37 = vpop.permute.xlu1 %2787  ;;  %v3870_v13 = vcombine.low %v4388_v43, %v4389_v6 }
 0x16e   : > { %v3068_v62 = vsel %vm3042_vm13, %v3035_v22, %v2788_v37  ;;  %v4391_v22 = vld [vmem:[%s4468_s19 + $0x4c] sm:$0xf] }
 0x16f   : > { %v2772_v34 = vpop.permute.xlu0 %2771  ;;  %4251 = vmatprep.mubr.msk.bf16.mxu1 %vm3075_vm14, %v3068_v62  ;;  %v3862_v37 = vcombine.low %v4390_v2, %v4391_v22  ;;  %v3863_v62 = vcombine.low %v5735_v44, %v5741_v28 }
 0x170   : > { %v3052_v46 = vsel %vm3042_vm13, %v3019_v54, %v2772_v34 }
 0x171   : > { %4235 = vmatprep.mubr.msk.bf16.mxu0 %vm3075_vm14, %v3052_v46 }
 0x176   : > { %v2200_v51 = vpop.permute.xlu1 %2199 }
 0x177   : > { %v2840_v34 = vsel %vm2795_vm6, %v3870_v13, %v2200_v51 }
 0x179   : > { %v2184_v41 = vpop.permute.xlu0 %2183 }
 0x17a   : > { %v2790_v55 = vpop.permute.xlu1 %2789  ;;  %v2816_v49 = vsel %vm2795_vm6, %v3862_v37, %v2184_v41 }
 0x17b   : > { %v3070_v26 = vsel %vm3042_vm13, %v3037_v52, %v2790_v55 }
 0x17c   : > { %4252 = vmatmul.mubr.msk.bf16.gmra.mrb[8].mxu1 %vm3075_vm14, %v3070_v26 }
 0x17d   : > { %v2774_v24 = vpop.permute.xlu0 %2773 }
 0x17e   : > { %v3054_v4 = vsel %vm3042_vm13, %v3021_v32, %v2774_v24 }
 0x17f   : > { %4236 = vmatmul.mubr.msk.bf16.gmra.mrb[8].mxu0 %vm3075_vm14, %v3054_v4 }
 0x183   : > { %v2202_v57 = vpop.permute.xlu1 %2201 }
 0x184   : > { %v2843_v36 = vsel %vm2795_vm6, %v3871_v27, %v2202_v57 }
 0x186   : > { %v2186_v61 = vpop.permute.xlu0 %2185 }
 0x187   : > { %v2280_v35 = vpop.permute.xlu1 %2279  ;;  %v2819_v30 = vsel %vm2795_vm6, %v3863_v62, %v2186_v61 }
 0x188   : > { %v2874_v23 = vsel %vm2844_vm7, %v2840_v34, %v2280_v35 }
 0x18a   : > { %v2264_v45 = vpop.permute.xlu0 %2263 }
 0x18b   : > { %v2282_v63 = vpop.permute.xlu1 %2281  ;;  %v2858_v60 = vsel %vm2844_vm7, %v2816_v49, %v2264_v45 }
 0x18c   : > { %v2876_v33 = vsel %vm2844_vm7, %v2843_v36, %v2282_v63 }
 0x18e   : > { %v2266_v12 = vpop.permute.xlu0 %2265 }
 0x18f   : > { %v2376_v18 = vpop.permute.xlu1 %2375  ;;  %v2860_v44 = vsel %vm2844_vm7, %v2819_v30, %v2266_v12 }
 0x190   : > { %v2907_v42 = vsel %vm2877_vm8, %v2874_v23, %v2376_v18 }
 0x192   : > { %v2360_v47 = vpop.permute.xlu0 %2359 }
 0x193   : > { %v2378_v5 = vpop.permute.xlu1 %2377  ;;  %v2891_v28 = vsel %vm2877_vm8, %v2858_v60, %v2360_v47 }
 0x194   : > { %v2909_v38 = vsel %vm2877_vm8, %v2876_v33, %v2378_v5 }
 0x196   : > { %v2362_v21 = vpop.permute.xlu0 %2361 }
 0x197   : > { %v2893_v51 = vsel %vm2877_vm8, %v2860_v44, %v2362_v21 }
 0x19a   : > { %v2456_v40 = vpop.permute.xlu1 %2455 }
 0x19b   : > { %v2440_v29 = vpop.permute.xlu0 %2439  ;;  %v2940_v59 = vsel %vm2910_vm9, %v2907_v42, %v2456_v40 }
 0x19c   : > { %v2924_v53 = vsel %vm2910_vm9, %v2891_v28, %v2440_v29 }
 0x19f   : > { %v2458_v16 = vpop.permute.xlu1 %2457 }
 0x1a0   : > { %v2942_v56 = vsel %vm2910_vm9, %v2909_v38, %v2458_v16 }
 0x1a2   : > { %v2442_v0 = vpop.permute.xlu0 %2441 }
 0x1a3   : > { %v2536_v50 = vpop.permute.xlu1 %2535  ;;  %v2926_v7 = vsel %vm2910_vm9, %v2893_v51, %v2442_v0 }
 0x1a4   : > { %v2973_v8 = vsel %vm2943_vm10, %v2940_v59, %v2536_v50 }
 0x1a6   : > { %v2520_v3 = vpop.permute.xlu0 %2519 }
 0x1a7   : > { %v2538_v31 = vpop.permute.xlu1 %2537  ;;  %v2957_v1 = vsel %vm2943_vm10, %v2924_v53, %v2520_v3 }
 0x1a8   : > { %v2975_v55 = vsel %vm2943_vm10, %v2942_v56, %v2538_v31 }
 0x1aa   : > { %v2522_v39 = vpop.permute.xlu0 %2521 }
 0x1ab   : > { %v2632_v9 = vpop.permute.xlu1 %2631  ;;  %v2959_v48 = vsel %vm2943_vm10, %v2926_v7, %v2522_v39 }
 0x1ac   : > { %v3006_v25 = vsel %vm2976_vm11, %v2973_v8, %v2632_v9 }
 0x1ae   : > { %v2616_v15 = vpop.permute.xlu0 %2615 }
 0x1af   : > { %v2634_v17 = vpop.permute.xlu1 %2633  ;;  %v2990_v4 = vsel %vm2976_vm11, %v2957_v1, %v2616_v15 }
 0x1b0   : > { %v3008_v57 = vsel %vm2976_vm11, %v2975_v55, %v2634_v17 }
 0x1b2   : > { %v2618_v14 = vpop.permute.xlu0 %2617 }
 0x1b3   : > { %v2992_v12 = vsel %vm2976_vm11, %v2959_v48, %v2618_v14 }
 0x1b6   : > { %v2712_v11 = vpop.permute.xlu1 %2711 }
 0x1b7   : > { %v3039_v41 = vsel %vm3009_vm12, %v3006_v25, %v2712_v11 }
 0x1b8   : > { %v2696_v54 = vpop.permute.xlu0 %2695 }
 0x1b9   : > { %v3023_v18 = vsel %vm3009_vm12, %v2990_v4, %v2696_v54 }
 0x1bb   : > { %v2714_v46 = vpop.permute.xlu1 %2713 }
 0x1bc   : > { %v3041_v29 = vsel %vm3009_vm12, %v3008_v57, %v2714_v46 }
 0x1bd   : > { %v2698_v58 = vpop.permute.xlu0 %2697 }
 0x1be   : > { %v3025_v16 = vsel %vm3009_vm12, %v2992_v12, %v2698_v58 }
 0x1bf   : > { %v2792_v10 = vpop.permute.xlu1 %2791  ;;  %v4229_v52 = vpop.f32.mrb[0].mxu0 }
 0x1c0   : > { %v3072_v26 = vsel %vm3042_vm13, %v3039_v41, %v2792_v10  ;;  %v3255_v20 = vadd.f32 %v4229_v52, %v6226_v19  ;;  %v4245_v32 = vpop.f32.mrb[0].mxu1  ;;  %v3246_v24 = vpop.f32.mrb[1].mxu0 }
 0x1c1   : > { %4255 = vmatprep.mubr.msk.bf16.mxu1 %vm3075_vm14, %v3072_v26  ;;  %v3319_v61 = vadd.f32 %v4245_v32, %v6226_v19  ;;  %v3247_v35 = vadd.f32 %v6226_v19, %v3246_v24  ;;  %v3310_v45 = vpop.f32.mrb[1].mxu1  ;;  %v4230_v63 = vpop.f32.mrb[2].mxu0 }
 0x1c2   : > { %v2776_v47 = vpop.permute.xlu0 %2775  ;;  %v3311_v5 = vadd.f32 %v6226_v19, %v3310_v45  ;;  %v3258_v21 = vadd.f32 %v4230_v63, %v6226_v19  ;;  %v4246_v40 = vpop.f32.mrb[2].mxu1  ;;  %v3375_v9 = vmax.f32 %v3255_v20, 0.0 }
 0x1c3   : > { %v3056_v0 = vsel %vm3042_vm13, %v3023_v18, %v2776_v47  ;;  %v3322_v50 = vadd.f32 %v4246_v40, %v6226_v19  ;;  %v3249_v3 = vpop.f32.mrb[3].mxu0  ;;  %v3313_v31 = vpop.f32.mrb[3].mxu1  ;;  %v3391_v6 = vmax.f32 %v3319_v61, 0.0  ;;  %v3373_v13 = vmax.f32 %v3247_v35, 0.0 }
 0x1c4   : > { %4239 = vmatprep.mubr.msk.bf16.mxu0 %vm3075_vm14, %v3056_v0  ;;  %v2794_v39 = vpop.permute.xlu1 %2793  ;;  %v3376_v15 = vmax.f32 %v3258_v21, 0.0  ;;  %v3250_v17 = vadd.f32 %v6226_v19, %v3249_v3  ;;  %v3314_v14 = vadd.f32 %v6226_v19, %v3313_v31  ;;  %v3389_v22 = vmax.f32 %v3311_v5, 0.0 }
 0x1c5   : > { %v3074_v43 = vsel %vm3042_vm13, %v3041_v29, %v2794_v39  ;;  %v3392_v11 = vmax.f32 %v3322_v50, 0.0 }
 0x1c6   : > { %v2778_v2 = vpop.permute.xlu0 %2777  ;;  %4256 = vmatmul.mubr.msk.bf16.gmra.mrb[12].mxu1 %vm3075_vm14, %v3074_v43  ;;  %v4084_v37 = vpack.c.bf16 %v3376_v15, %v3375_v9  ;;  %v3374_v27 = vmax.f32 %v3250_v17, 0.0  ;;  %v3390_v62 = vmax.f32 %v3314_v14, 0.0 }
 0x1c7   : > { %v3058_v54 = vsel %vm3042_vm13, %v3025_v16, %v2778_v2  ;;  %v4124_v34 = vpack.c.bf16 %v3392_v11, %v3391_v6 }
 0x1c8   : > { %4240 = vmatmul.mubr.msk.bf16.gmra.mrb[12].mxu0 %vm3075_vm14, %v3058_v54  ;;  %4156 = vst [vmem:[%s6261_s23 + $0x8] sm:$0xff] %v4084_v37   ;;  %v4079_v23 = vpack.c.bf16 %v3374_v27, %v3373_v13  ;;  %v4119_v49 = vpack.c.bf16 %v3390_v62, %v3389_v22 }
 0x1c9   : > { %4164 = vst [vmem:[%s6261_s23 + $0x48] sm:$0xff] %v4124_v34  }
 0x1ca   : > { %4080 = vst [vmem:[%s6261_s23] sm:$0xff] %v4079_v23   ;;  %4163 = vst [vmem:[%s6261_s23 + $0x40] sm:$0xff] %v4119_v49  }
 0x210   : > { %v4249_v42 = vpop.f32.mrb[4].mxu1 }
 0x211   : > { %v3335_v46 = vadd.f32 %v4249_v42, %v6226_v19  ;;  %v3326_v36 = vpop.f32.mrb[5].mxu1  ;;  %v4233_v30 = vpop.f32.mrb[4].mxu0 }
 0x212   : > { %v3327_v60 = vadd.f32 %v6226_v19, %v3326_v36  ;;  %v4250_v59 = vpop.f32.mrb[6].mxu1  ;;  %v3271_v33 = vadd.f32 %v4233_v30, %v6226_v19  ;;  %v3262_v44 = vpop.f32.mrb[5].mxu0 }
 0x213   : > { %v3338_v28 = vadd.f32 %v4250_v59, %v6226_v19  ;;  %v3329_v8 = vpop.f32.mrb[7].mxu1  ;;  %v3263_v38 = vadd.f32 %v6226_v19, %v3262_v44  ;;  %v4234_v51 = vpop.f32.mrb[6].mxu0  ;;  %v3395_v25 = vmax.f32 %v3335_v46, 0.0 }
 0x214   : > { %v3330_v53 = vadd.f32 %v6226_v19, %v3329_v8  ;;  %v3274_v58 = vadd.f32 %v4234_v51, %v6226_v19  ;;  %v3265_v7 = vpop.f32.mrb[7].mxu0  ;;  %v3393_v1 = vmax.f32 %v3327_v60, 0.0  ;;  %v3379_v52 = vmax.f32 %v3271_v33, 0.0 }
 0x215   : > { %v3396_v56 = vmax.f32 %v3338_v28, 0.0  ;;  %v3266_v41 = vadd.f32 %v6226_v19, %v3265_v7  ;;  %v3377_v26 = vmax.f32 %v3263_v38, 0.0 }
 0x216   : > { %v3394_v10 = vmax.f32 %v3330_v53, 0.0  ;;  %v3380_v55 = vmax.f32 %v3274_v58, 0.0 }
 0x217   : > { %v4134_v48 = vpack.c.bf16 %v3396_v56, %v3395_v25  ;;  %v3378_v20 = vmax.f32 %v3266_v41, 0.0 }
 0x218   : > { %v4129_v32 = vpack.c.bf16 %v3394_v10, %v3393_v1  ;;  %v4094_v24 = vpack.c.bf16 %v3380_v55, %v3379_v52 }
 0x219   : > { %4166 = vst [vmem:[%s6261_s23 + $0x58] sm:$0xff] %v4134_v48   ;;  %v4089_v4 = vpack.c.bf16 %v3378_v20, %v3377_v26 }
 0x21a   : > { %4165 = vst [vmem:[%s6261_s23 + $0x50] sm:$0xff] %v4129_v32   ;;  %4158 = vst [vmem:[%s6261_s23 + $0x18] sm:$0xff] %v4094_v24  }
 0x21b   : > { %4157 = vst [vmem:[%s6261_s23 + $0x10] sm:$0xff] %v4089_v4  }
 0x24f   : > { %v4253_v57 = vpop.f32.mrb[8].mxu1 }
 0x250   : > { %v3351_v61 = vadd.f32 %v4253_v57, %v6226_v19  ;;  %v3342_v35 = vpop.f32.mrb[9].mxu1 }
 0x251   : > { %v3343_v45 = vadd.f32 %v6226_v19, %v3342_v35  ;;  %v4254_v63 = vpop.f32.mrb[10].mxu1 }
 0x252   : > { %v4237_v12 = vpop.f32.mrb[8].mxu0  ;;  %v3354_v18 = vadd.f32 %v4254_v63, %v6226_v19  ;;  %v3345_v47 = vpop.f32.mrb[11].mxu1  ;;  %v3399_v29 = vmax.f32 %v3351_v61, 0.0 }
 0x253   : > { %v3287_v5 = vadd.f32 %v4237_v12, %v6226_v19  ;;  %v3278_v21 = vpop.f32.mrb[9].mxu0  ;;  %v3346_v40 = vadd.f32 %v6226_v19, %v3345_v47  ;;  %v3397_v3 = vmax.f32 %v3343_v45, 0.0 }
 0x254   : > { %v3279_v16 = vadd.f32 %v6226_v19, %v3278_v21  ;;  %v4238_v0 = vpop.f32.mrb[10].mxu0  ;;  %v3400_v50 = vmax.f32 %v3354_v18, 0.0 }
 0x255   : > { %v3290_v31 = vadd.f32 %v4238_v0, %v6226_v19  ;;  %v3281_v39 = vpop.f32.mrb[11].mxu0  ;;  %v3398_v9 = vmax.f32 %v3346_v40, 0.0  ;;  %v3383_v14 = vmax.f32 %v3287_v5, 0.0 }
 0x256   : > { %v4144_v15 = vpack.c.bf16 %v3400_v50, %v3399_v29  ;;  %v3282_v17 = vadd.f32 %v6226_v19, %v3281_v39  ;;  %v3381_v13 = vmax.f32 %v3279_v16, 0.0 }
 0x257   : > { %v3384_v43 = vmax.f32 %v3290_v31, 0.0  ;;  %v4139_v6 = vpack.c.bf16 %v3398_v9, %v3397_v3 }
 0x258   : > { %4168 = vst [vmem:[%s6261_s23 + $0x68] sm:$0xff] %v4144_v15   ;;  %v3382_v11 = vmax.f32 %v3282_v17, 0.0 }
 0x259   : > { %v4104_v2 = vpack.c.bf16 %v3384_v43, %v3383_v14  ;;  %4167 = vst [vmem:[%s6261_s23 + $0x60] sm:$0xff] %v4139_v6  }
 0x25a   : > { %v4099_v22 = vpack.c.bf16 %v3382_v11, %v3381_v13 }
 0x25b   : > { %4160 = vst [vmem:[%s6261_s23 + $0x28] sm:$0xff] %v4104_v2  }
 0x25c   : > { %4159 = vst [vmem:[%s6261_s23 + $0x20] sm:$0xff] %v4099_v22  }
 0x299   : > { %v4257_v37 = vpop.f32.mrb[12].mxu1 }
 0x29a   : > { %v3367_v27 = vadd.f32 %v4257_v37, %v6226_v19  ;;  %v3358_v62 = vpop.f32.mrb[13].mxu1 }
 0x29b   : > { %v4241_v54 = vpop.f32.mrb[12].mxu0  ;;  %v3359_v34 = vadd.f32 %v6226_v19, %v3358_v62  ;;  %v4258_v23 = vpop.f32.mrb[14].mxu1 }
 0x29c   : > { %v3303_v49 = vadd.f32 %v4241_v54, %v6226_v19  ;;  %v3294_v42 = vpop.f32.mrb[13].mxu0  ;;  %v3370_v46 = vadd.f32 %v4258_v23, %v6226_v19  ;;  %v3361_v36 = vpop.f32.mrb[15].mxu1  ;;  %v3403_v33 = vmax.f32 %v3367_v27, 0.0 }
 0x29d   : > { %v3295_v30 = vadd.f32 %v6226_v19, %v3294_v42  ;;  %v4242_v60 = vpop.f32.mrb[14].mxu0  ;;  %v3362_v59 = vadd.f32 %v6226_v19, %v3361_v36  ;;  %v3401_v38 = vmax.f32 %v3359_v34, 0.0 }
 0x29e   : > { %v3306_v44 = vadd.f32 %v4242_v60, %v6226_v19  ;;  %v3404_v28 = vmax.f32 %v3370_v46, 0.0  ;;  %v3297_v8 = vpop.f32.mrb[15].mxu0  ;;  %v3387_v25 = vmax.f32 %v3303_v49, 0.0 }
 0x29f   : > { %v3298_v51 = vadd.f32 %v6226_v19, %v3297_v8  ;;  %v3402_v53 = vmax.f32 %v3362_v59, 0.0  ;;  %v3385_v7 = vmax.f32 %v3295_v30, 0.0 }
 0x2a0   : > { %v3388_v58 = vmax.f32 %v3306_v44, 0.0  ;;  %v4154_v56 = vpack.c.bf16 %v3404_v28, %v3403_v33 }
 0x2a1   : > { %v3386_v1 = vmax.f32 %v3298_v51, 0.0  ;;  %v4149_v41 = vpack.c.bf16 %v3402_v53, %v3401_v38 }
 0x2a2   : > { %v4114_v10 = vpack.c.bf16 %v3388_v58, %v3387_v25  ;;  %4170 = vst [vmem:[%s6261_s23 + $0x78] sm:$0xff] %v4154_v56  }
 0x2a3   : > { %v4109_v52 = vpack.c.bf16 %v3386_v1, %v3385_v7  ;;  %4169 = vst [vmem:[%s6261_s23 + $0x70] sm:$0xff] %v4149_v41  }
 0x2a4   : > { %4162 = vst [vmem:[%s6261_s23 + $0x38] sm:$0xff] %v4114_v10  }
 0x2a5   : > { %4161 = vst [vmem:[%s6261_s23 + $0x30] sm:$0xff] %v4109_v52  }
 0x2a6 PF: > { %s13_s14 = sadd.s32 1, %s4414_s14   ;;  %s6323_s12 = smov %s4410_s13 }
 0x2a7   : > { %p10_p5 = scmp.ge.s32.totalorder %s13_s14, 4   ;;  %s6324_s13 = smov %s6326_s15 }
 0x2a9   :  { %12 = sbr.rel (!%p10_p5) target bundleno = 2 (0x2), region = 74 }

</bundles_post_ra>
